<compile_context>
chip_gen: v5e
topology: v5e:2x2
jax: 0.10.0
libtpu: 0.0.40
codegen_flags: <defaults>
</compile_context>

<pallas_src>
import functools

import jax
import jax.numpy as jnp
from jax import lax
from jax.experimental import pallas as pl
from jax.experimental.pallas import tpu as pltpu

EPS = 1e-6
GROUPS = 32


def _pick_tile(n, cap):
    """Largest tile in {2048,...,128} (<= cap) dividing n, else the full extent n."""
    for t in (2048, 1024, 512, 256, 128):
        if t <= cap and n % t == 0:
            return t
    return n


# --------------------------------------------------------------------------
# Pass 1: per-channel sum / sum-of-squares over HW (tiled reduction).
# The tiny per-group combine happens in the wrapper (O(B*C) JAX glue).
# --------------------------------------------------------------------------
def _gn_stats_kernel(x_ref, s1_ref, s2_ref):
    t = pl.program_id(1)

    @pl.when(t == 0)
    def _():
        s1_ref[...] = jnp.zeros_like(s1_ref)
        s2_ref[...] = jnp.zeros_like(s2_ref)

    x = x_ref[0]                                            # (C, T) f32
    s1_ref[0] += jnp.sum(x, axis=1, keepdims=True)          # (C, 1)
    s2_ref[0] += jnp.sum(x * x, axis=1, keepdims=True)      # (C, 1)


# --------------------------------------------------------------------------
# Pass 2: normalize + fused K/V projection (single (2C,C) bf16 MXU matmul,
# f32 accumulation).  q is NOT produced here (folded into pass 3).
# --------------------------------------------------------------------------
def _kv_kernel(x_ref, scale_ref, shift_ref, wkv_ref, bkv_ref, k_ref, v_ref, *, C):
    h = x_ref[0] * scale_ref[0] + shift_ref[0]              # (C, T) f32 GroupNorm
    hb = h.astype(jnp.bfloat16)
    kv = jnp.dot(wkv_ref[...], hb,
                 preferred_element_type=jnp.float32) + bkv_ref[...]     # (2C, T) f32
    k_ref[0] = kv[:C].astype(jnp.bfloat16)
    v_ref[0] = kv[C:].astype(jnp.bfloat16)


# --------------------------------------------------------------------------
# Pass 3: flash attention (online softmax) + q projection + proj_out + residual.
# Grid = (B, n_q, n_kv); the kv HBM block (usually the whole K/V of a batch) is
# walked in VMEM-resident chunks of size `tc` by an in-kernel loop.
# Lane-dense layout: scores (tc, TQ), m/l (1, TQ), acc (C, TQ).
# --------------------------------------------------------------------------
def _attn_kernel(x_ref, scale_ref, shift_ref, k_ref, v_ref,
                 wq_ref, bq_ref, wp_ref, bp_ref, o_ref,
                 q_sc, m_sc, l_sc, acc_sc, *, n_chunks, tc, attn_scale):
    ki = pl.program_id(2)

    @pl.when(ki == 0)
    def _():
        # GroupNorm + Wq for this q tile, computed once per q tile; softmax
        # scale 1/sqrt(C) folded into q before the bf16 cast.
        h = x_ref[0] * scale_ref[0] + shift_ref[0]                        # (C, TQ)
        q = jnp.dot(wq_ref[...], h.astype(jnp.bfloat16),
                    preferred_element_type=jnp.float32) + bq_ref[...]
        q_sc[...] = (q * attn_scale).astype(jnp.bfloat16)                 # (C, TQ)
        m_sc[...] = jnp.full(m_sc.shape, -jnp.inf, jnp.float32)
        l_sc[...] = jnp.zeros_like(l_sc)
        acc_sc[...] = jnp.zeros_like(acc_sc)

    def kv_step(c, carry):
        off = pl.multiple_of(c * tc, tc)
        k = k_ref[0, :, pl.ds(off, tc)]                                   # (C, tc) bf16
        v = v_ref[0, :, pl.ds(off, tc)]                                   # (C, tc) bf16
        q = q_sc[...]                                                     # (C, TQ) bf16
        # s[j, i] = sum_c k[c, j] * q[c, i]  -> lane dim is TQ (lane-dense for any C)
        s = lax.dot_general(k, q, (((0,), (0,)), ((), ())),
                            preferred_element_type=jnp.float32)           # (tc, TQ) f32
        m_prev = m_sc[...]                                                # (1, TQ)
        m_new = jnp.maximum(m_prev, jnp.max(s, axis=0, keepdims=True))
        alpha = jnp.exp(m_prev - m_new)                                   # (1, TQ)
        p = jnp.exp(s - m_new)                                            # (tc, TQ)
        l_sc[...] = alpha * l_sc[...] + jnp.sum(p, axis=0, keepdims=True)
        # pv[c, i] = sum_j v[c, j] * p[j, i]
        acc_sc[...] = alpha * acc_sc[...] + jnp.dot(
            v, p.astype(jnp.bfloat16), preferred_element_type=jnp.float32)
        m_sc[...] = m_new
        return carry

    lax.fori_loop(0, n_chunks, kv_step, 0, unroll=(n_chunks <= 8))

    @pl.when(ki == pl.num_programs(2) - 1)
    def _():
        a = acc_sc[...] * pl.reciprocal(l_sc[...], approx=True)           # (C, TQ) f32
        # proj_out in bf16 (f32 accumulation) — avoids the slow f32 MXU path.
        out = jnp.dot(wp_ref[...], a.astype(jnp.bfloat16),
                      preferred_element_type=jnp.float32)                 # (C, TQ)
        o_ref[0] = x_ref[0] + out + bp_ref[...]


# --------------------------------------------------------------------------
# Wrapper
# --------------------------------------------------------------------------
def nonlocal_block_pallas(x_nchw, params, *, max_q_tile=512, kv_vmem_budget=16 << 20):
    """x_nchw: (B, C, H, W) float32; params: dict (see init_params)."""
    B, C, H, W = x_nchw.shape
    assert C % GROUPS == 0, "GroupNorm(32) requires channels % 32 == 0"
    HW = H * W
    f32, bf16 = jnp.float32, jnp.bfloat16

    # Channels-first throughout; reshape is free (no HBM transpose traffic).
    x = x_nchw.reshape(B, C, HW).astype(f32)
    cpg = C // GROUPS

    gamma = params["gn_gamma"].reshape(C).astype(f32)
    beta = params["gn_beta"].reshape(C).astype(f32)
    wq = params["wq"].reshape(C, C).astype(bf16)
    wp = params["wp"].reshape(C, C).astype(bf16)
    bq = params["bq"].reshape(C, 1).astype(f32)
    bp = params["bp"].reshape(C, 1).astype(f32)
    # Fused K/V projection: one (2C, C) bf16 matrix, one (2C, 1) bias.
    wkv = jnp.concatenate([params["wk"].reshape(C, C),
                           params["wv"].reshape(C, C)], axis=0).astype(bf16)
    bkv = jnp.concatenate([params["bk"].reshape(C, 1),
                           params["bv"].reshape(C, 1)], axis=0).astype(f32)

    # ---- tile selection ---------------------------------------------------
    t_hw = _pick_tile(HW, 2048 if C <= 128 else 512)     # stats / KV-projection passes
    tq = _pick_tile(HW, max_q_tile)                      # attention q tile
    if B * (HW // tq) < 2:                               # keep both v7x TCs busy
        for t in (tq // 2, 512, 256, 128):
            if t >= 128 and HW % t == 0:
                tq = t
                break
    # K/V block: keep the whole (C, HW) K and V resident per batch when the
    # double-buffered bf16 footprint fits the budget; else fall back to a kv grid axis.
    if 2 * (2 * C * HW * 2) <= kv_vmem_budget:
        tk = HW
    else:
        tk = _pick_tile(HW, max(128, kv_vmem_budget // (2 * 2 * C * 2)))
    tc = _pick_tile(tk, 512)                             # in-kernel online-softmax chunk
    n_q, n_kv, n_chunks = HW // tq, HW // tk, tk // tc

    full2d = lambda *_: (0, 0)

    # ---- pass 1: GroupNorm sums -------------------------------------------
    s1, s2 = pl.pallas_call(
        _gn_stats_kernel,
        out_shape=(jax.ShapeDtypeStruct((B, C, 1), f32),
                   jax.ShapeDtypeStruct((B, C, 1), f32)),
        grid_spec=pltpu.PrefetchScalarGridSpec(
            num_scalar_prefetch=0,
            grid=(B, HW // t_hw),
            in_specs=[pl.BlockSpec((1, C, t_hw), lambda b, t: (b, 0, t))],
            out_specs=[pl.BlockSpec((1, C, 1), lambda b, t: (b, 0, 0)),
                       pl.BlockSpec((1, C, 1), lambda b, t: (b, 0, 0))],
        ),
        compiler_params=pltpu.CompilerParams(
            dimension_semantics=("parallel", "arbitrary")),
    )(x)

    # ---- tiny per-group combine (O(B*C) JAX glue; replaces the gmap matmul) -
    inv_n = 1.0 / float(cpg * HW)
    s1g = jnp.sum(s1.reshape(B, GROUPS, cpg), axis=2) * inv_n      # group mean
    s2g = jnp.sum(s2.reshape(B, GROUPS, cpg), axis=2) * inv_n      # group E[x^2]
    var = s2g - s1g * s1g                                          # biased var (PyTorch GN)
    inv_std = lax.rsqrt(var + EPS)                                 # (B, G)
    mean_c = jnp.repeat(s1g, cpg, axis=1)                          # (B, C)
    inv_c = jnp.repeat(inv_std, cpg, axis=1)                       # (B, C)
    scale = (gamma[None, :] * inv_c)[:, :, None]                   # (B, C, 1)
    shift = (beta[None, :] - mean_c * gamma[None, :] * inv_c)[:, :, None]

    # ---- pass 2: normalize + fused K/V projection ---------------------------
    k, v = pl.pallas_call(
        functools.partial(_kv_kernel, C=C),
        out_shape=(jax.ShapeDtypeStruct((B, C, HW), bf16),
                   jax.ShapeDtypeStruct((B, C, HW), bf16)),
        grid_spec=pltpu.PrefetchScalarGridSpec(
            num_scalar_prefetch=0,
            grid=(B, HW // t_hw),
            in_specs=[
                pl.BlockSpec((1, C, t_hw), lambda b, t: (b, 0, t)),
                pl.BlockSpec((1, C, 1), lambda b, t: (b, 0, 0)),
                pl.BlockSpec((1, C, 1), lambda b, t: (b, 0, 0)),
                pl.BlockSpec((2 * C, C), full2d),
                pl.BlockSpec((2 * C, 1), full2d),
            ],
            out_specs=[pl.BlockSpec((1, C, t_hw), lambda b, t: (b, 0, t))] * 2,
        ),
        compiler_params=pltpu.CompilerParams(
            dimension_semantics=("parallel", "parallel")),
        cost_estimate=pl.CostEstimate(
            flops=int(4 * B * HW * C * C),
            transcendentals=0,
            bytes_accessed=int(B * C * HW * 4 + 2 * B * C * HW * 2 + 2 * C * C * 2)),
    )(x, scale, shift, wkv, bkv)

    # ---- pass 3: flash attention + q proj + proj_out + residual -------------
    attn_scale = float(C) ** (-0.5)
    vmem_est = (2 * (C * tq * 4) * 2          # x in + out blocks, double-buffered
                + 2 * 2 * (C * tk * 2)        # k + v blocks, double-buffered bf16
                + 2 * 2 * (C * C * 2)         # wq + wp, double-buffered bf16
                + C * tq * (2 + 4)            # q + acc scratch
                + 4 * (tc * tq * 4))          # s/p temporaries (headroom)
    vmem_limit = int(min(max(vmem_est + (8 << 20), 32 << 20), 56 << 20))

    out = pl.pallas_call(
        functools.partial(_attn_kernel, n_chunks=n_chunks, tc=tc,
                          attn_scale=attn_scale),
        out_shape=jax.ShapeDtypeStruct((B, C, HW), f32),
        grid_spec=pltpu.PrefetchScalarGridSpec(
            num_scalar_prefetch=0,
            grid=(B, n_q, n_kv),
            in_specs=[
                pl.BlockSpec((1, C, tq), lambda b, qi, ki: (b, 0, qi)),   # x (q + residual)
                pl.BlockSpec((1, C, 1), lambda b, qi, ki: (b, 0, 0)),     # GN scale
                pl.BlockSpec((1, C, 1), lambda b, qi, ki: (b, 0, 0)),     # GN shift
                pl.BlockSpec((1, C, tk), lambda b, qi, ki: (b, 0, ki)),   # k
                pl.BlockSpec((1, C, tk), lambda b, qi, ki: (b, 0, ki)),   # v
                pl.BlockSpec((C, C), full2d),                             # wq
                pl.BlockSpec((C, 1), full2d),                             # bq
                pl.BlockSpec((C, C), full2d),                             # wp
                pl.BlockSpec((C, 1), full2d),                             # bp
            ],
            out_specs=pl.BlockSpec((1, C, tq), lambda b, qi, ki: (b, 0, qi)),
            scratch_shapes=[
                pltpu.VMEM((C, tq), bf16),    # pre-scaled q for this q tile
                pltpu.VMEM((1, tq), f32),     # running max   (lane-dense)
                pltpu.VMEM((1, tq), f32),     # running sum   (lane-dense)
                pltpu.VMEM((C, tq), f32),     # output accumulator (lane-dense)
            ],
        ),
        compiler_params=pltpu.CompilerParams(
            dimension_semantics=("parallel", "parallel", "arbitrary"),
            vmem_limit_bytes=vmem_limit),
        cost_estimate=pl.CostEstimate(
            flops=int(4 * B * HW * HW * C + 3 * B * HW * C * C),
            transcendentals=int(B * HW * HW),
            bytes_accessed=int(B * C * HW * (4 + 4)
                               + 2 * B * C * HW * 2 * (n_q if n_kv > 1 else 1)
                               + 2 * C * C * 2)),
    )(x, scale, shift, k, v, wq, bq, wp, bp)

    return out.reshape(B, C, H, W)


# --------------------------------------------------------------------------
# Pure-JAX reference matching the PyTorch forward exactly (NCHW, f32)
# --------------------------------------------------------------------------
def nonlocal_block_reference(x, params):
    B, C, H, W = x.shape
    cpg = C // GROUPS
    xg = x.reshape(B, GROUPS, cpg, H, W)
    mean = jnp.mean(xg, axis=(2, 3, 4), keepdims=True)
    var = jnp.mean((xg - mean) ** 2, axis=(2, 3, 4), keepdims=True)
    h = ((xg - mean) / jnp.sqrt(var + EPS)).reshape(B, C, H, W)
    h = h * params["gn_gamma"].reshape(1, C, 1, 1) + params["gn_beta"].reshape(1, C, 1, 1)

    def conv1x1(t, w, b):
        return jnp.einsum("bchw,oc->bohw", t, w.reshape(C, C)) + b.reshape(1, C, 1, 1)

    q = conv1x1(h, params["wq"], params["bq"])
    k = conv1x1(h, params["wk"], params["bk"])
    v = conv1x1(h, params["wv"], params["bv"])
    q = q.reshape(B, C, H * W).transpose(0, 2, 1)   # (B, HW, C)
    k = k.reshape(B, C, H * W)                      # (B, C, HW)
    v = v.reshape(B, C, H * W)                      # (B, C, HW)
    attn = jnp.einsum("bic,bcj->bij", q, k) * (int(C) ** (-0.5))
    attn = jax.nn.softmax(attn, axis=2)
    attn_t = attn.transpose(0, 2, 1)                # (B, HW_j, HW_i)
    a = jnp.einsum("bcj,bji->bci", v, attn_t).reshape(B, C, H, W)
    a = conv1x1(a, params["wp"], params["bp"])
    return x + a


def init_params(key, C):
    ks = jax.random.split(key, 9)
    scale = 0.1
    return {
        "gn_gamma": jnp.ones((C,), jnp.float32)
                    + 0.05 * jax.random.normal(ks[0], (C,), jnp.float32),
        "gn_beta": 0.05 * jax.random.normal(ks[1], (C,), jnp.float32),
        "wq": scale * jax.random.normal(ks[2], (C, C, 1, 1), jnp.float32),
        "bq": scale * jax.random.normal(ks[3], (C,), jnp.float32),
        "wk": scale * jax.random.normal(ks[4], (C, C, 1, 1), jnp.float32),
        "bk": scale * jax.random.normal(ks[5], (C,), jnp.float32),
        "wv": scale * jax.random.normal(ks[6], (C, C, 1, 1), jnp.float32),
        "bv": scale * jax.random.normal(ks[7], (C,), jnp.float32),
        "wp": scale * jax.random.normal(ks[8], (C, C, 1, 1), jnp.float32),
        "bp": jnp.zeros((C,), jnp.float32),
    }


if __name__ == "__main__":
    # GroupNorm(num_groups=32) requires channels % 32 == 0 -> smallest C is 32.
    B, C, H, W = 2, 32, 16, 16           # HW = 256 -> single resident KV block per batch
    key = jax.random.PRNGKey(0)
    kx, kp = jax.random.split(key)
    x = jax.random.normal(kx, (B, C, H, W), jnp.float32)
    params = init_params(kp, C)

    fwd = jax.jit(nonlocal_block_pallas)
    out = jax.block_until_ready(fwd(x, params))

    ref = nonlocal_block_reference(x, params)
    assert out.shape == (B, C, H, W)
    max_err = float(jnp.max(jnp.abs(out - ref)))
    # bf16 MXU operands (q/k/v, attention, proj_out) with f32 accumulation:
    # expect ~1e-3..1e-2 abs error vs the pure-f32 reference.
    assert max_err < 3e-2, max_err

    print("KERNEL_OK")
</pallas_src>

<mosaic_0001>
module attributes {stable_mosaic.version = 11 : i64} {
  func.func @_attn_kernel(%arg0: i32, %arg1: i32, %arg2: i32, %arg3: memref<1x32x256xf32, #tpu.memory_space<vmem>>, %arg4: memref<1x32x1xf32, #tpu.memory_space<vmem>>, %arg5: memref<1x32x1xf32, #tpu.memory_space<vmem>>, %arg6: memref<1x32x256xbf16, #tpu.memory_space<vmem>>, %arg7: memref<1x32x256xbf16, #tpu.memory_space<vmem>>, %arg8: memref<32x32xbf16, #tpu.memory_space<vmem>>, %arg9: memref<32x1xf32, #tpu.memory_space<vmem>>, %arg10: memref<32x32xbf16, #tpu.memory_space<vmem>>, %arg11: memref<32x1xf32, #tpu.memory_space<vmem>>, %arg12: memref<1x32x256xf32, #tpu.memory_space<vmem>>, %arg13: memref<32x256xbf16, #tpu.memory_space<vmem>>, %arg14: memref<1x256xf32, #tpu.memory_space<vmem>>, %arg15: memref<1x256xf32, #tpu.memory_space<vmem>>, %arg16: memref<32x256xf32, #tpu.memory_space<vmem>>) attributes {dimension_semantics = [#tpu.dimension_semantics<parallel>, #tpu.dimension_semantics<parallel>, #tpu.dimension_semantics<arbitrary>], iteration_bounds = array<i64: 2, 1, 1>, scalar_prefetch = 0 : i64, scratch_operands = 4 : i64, tpu.core_type = #tpu.core_type<tc>, window_params = [{transform_indices = @transform_0, window_bounds = array<i64: 1, 32, 256>}, {transform_indices = @transform_1, window_bounds = array<i64: 1, 32, 1>}, {transform_indices = @transform_2, window_bounds = array<i64: 1, 32, 1>}, {transform_indices = @transform_3, window_bounds = array<i64: 1, 32, 256>}, {transform_indices = @transform_4, window_bounds = array<i64: 1, 32, 256>}, {pipeline_mode = #tpu.pipeline_mode<synchronous>, transform_indices = @transform_5, window_bounds = array<i64: 32, 32>}, {pipeline_mode = #tpu.pipeline_mode<synchronous>, transform_indices = @transform_6, window_bounds = array<i64: 32, 1>}, {pipeline_mode = #tpu.pipeline_mode<synchronous>, transform_indices = @transform_7, window_bounds = array<i64: 32, 32>}, {pipeline_mode = #tpu.pipeline_mode<synchronous>, transform_indices = @transform_8, window_bounds = array<i64: 32, 1>}, {transform_indices = @transform_9, window_bounds = array<i64: 1, 32, 256>}]} {
    %c0_i32 = arith.constant 0 : i32
    %0 = arith.cmpi eq, %arg2, %c0_i32 : i32
    %1 = arith.extui %0 : i1 to i32
    %c0_i32_0 = arith.constant 0 : i32
    %2 = arith.cmpi ne, %1, %c0_i32_0 : i32
    scf.if %2 {
      %c0_24 = arith.constant 0 : index
      %c0_25 = arith.constant 0 : index
      %c0_26 = arith.constant 0 : index
      %39 = vector.load %arg3[%c0_24, %c0_25, %c0_26] : memref<1x32x256xf32, #tpu.memory_space<vmem>>, vector<1x32x256xf32>
      %40 = vector.shape_cast %39 : vector<1x32x256xf32> to vector<32x256xf32>
      %c0_27 = arith.constant 0 : index
      %c0_28 = arith.constant 0 : index
      %c0_29 = arith.constant 0 : index
      %41 = vector.load %arg4[%c0_27, %c0_28, %c0_29] : memref<1x32x1xf32, #tpu.memory_space<vmem>>, vector<1x32x1xf32>
      %42 = vector.shape_cast %41 : vector<1x32x1xf32> to vector<32x1xf32>
      %43 = vector.broadcast %42 : vector<32x1xf32> to vector<32x256xf32>
      %44 = arith.mulf %40, %43 : vector<32x256xf32>
      %c0_30 = arith.constant 0 : index
      %c0_31 = arith.constant 0 : index
      %c0_32 = arith.constant 0 : index
      %45 = vector.load %arg5[%c0_30, %c0_31, %c0_32] : memref<1x32x1xf32, #tpu.memory_space<vmem>>, vector<1x32x1xf32>
      %46 = vector.shape_cast %45 : vector<1x32x1xf32> to vector<32x1xf32>
      %47 = vector.broadcast %46 : vector<32x1xf32> to vector<32x256xf32>
      %48 = arith.addf %44, %47 : vector<32x256xf32>
      %c0_33 = arith.constant 0 : index
      %c0_34 = arith.constant 0 : index
      %49 = vector.load %arg8[%c0_33, %c0_34] : memref<32x32xbf16, #tpu.memory_space<vmem>>, vector<32x32xbf16>
      %50 = arith.truncf %48 : vector<32x256xf32> to vector<32x256xbf16>
      %cst_35 = arith.constant dense<0.000000e+00> : vector<32x256xf32>
      %51 = tpu.matmul %49, %50, %cst_35 {dimension_numbers = #tpu.dot_dimension_numbers<[1], [0], [0], [1], [0, 0, 1, 1], [], []>} : vector<32x32xbf16>, vector<32x256xbf16>, vector<32x256xf32> -> vector<32x256xf32>
      %c0_36 = arith.constant 0 : index
      %c0_37 = arith.constant 0 : index
      %52 = vector.load %arg9[%c0_36, %c0_37] : memref<32x1xf32, #tpu.memory_space<vmem>>, vector<32x1xf32>
      %53 = vector.broadcast %52 : vector<32x1xf32> to vector<32x256xf32>
      %54 = arith.addf %51, %53 : vector<32x256xf32>
      %cst_38 = arith.constant 0.176776692 : f32
      %55 = vector.broadcast %cst_38 : f32 to vector<32x256xf32>
      %56 = arith.mulf %54, %55 : vector<32x256xf32>
      %57 = arith.truncf %56 : vector<32x256xf32> to vector<32x256xbf16>
      %c0_39 = arith.constant 0 : index
      %c0_40 = arith.constant 0 : index
      %58 = vector.load %arg13[%c0_39, %c0_40] : memref<32x256xbf16, #tpu.memory_space<vmem>>, vector<32x256xbf16>
      tpu.vector_store %arg13[%c0_39, %c0_40], %57 {strides = array<i32>} : memref<32x256xbf16, #tpu.memory_space<vmem>>, vector<32x256xbf16>,
      %cst_41 = arith.constant 0xFF800000 : f32
      %59 = vector.broadcast %cst_41 : f32 to vector<1x256xf32>
      %c0_42 = arith.constant 0 : index
      %c0_43 = arith.constant 0 : index
      %60 = vector.load %arg14[%c0_42, %c0_43] : memref<1x256xf32, #tpu.memory_space<vmem>>, vector<1x256xf32>
      tpu.vector_store %arg14[%c0_42, %c0_43], %59 {strides = array<i32>} : memref<1x256xf32, #tpu.memory_space<vmem>>, vector<1x256xf32>,
      %cst_44 = arith.constant 0.000000e+00 : f32
      %61 = vector.broadcast %cst_44 : f32 to vector<1x256xf32>
      %c0_45 = arith.constant 0 : index
      %c0_46 = arith.constant 0 : index
      %62 = vector.load %arg15[%c0_45, %c0_46] : memref<1x256xf32, #tpu.memory_space<vmem>>, vector<1x256xf32>
      tpu.vector_store %arg15[%c0_45, %c0_46], %61 {strides = array<i32>} : memref<1x256xf32, #tpu.memory_space<vmem>>, vector<1x256xf32>,
      %cst_47 = arith.constant 0.000000e+00 : f32
      %63 = vector.broadcast %cst_47 : f32 to vector<32x256xf32>
      %c0_48 = arith.constant 0 : index
      %c0_49 = arith.constant 0 : index
      %64 = vector.load %arg16[%c0_48, %c0_49] : memref<32x256xf32, #tpu.memory_space<vmem>>, vector<32x256xf32>
      tpu.vector_store %arg16[%c0_48, %c0_49], %63 {strides = array<i32>} : memref<32x256xf32, #tpu.memory_space<vmem>>, vector<32x256xf32>,
    } else {
    }
    %c0_i32_1 = arith.constant 0 : i32
    %c256_i32 = arith.constant 256 : i32
    %3 = arith.muli %c0_i32_1, %c256_i32 : i32
    %4 = tpu.assume_multiple %3, 256 : i32
    %c0 = arith.constant 0 : index
    %c0_2 = arith.constant 0 : index
    %5 = arith.index_cast %4 : i32 to index
    %6 = vector.load %arg6[%c0, %c0_2, %5] : memref<1x32x256xbf16, #tpu.memory_space<vmem>>, vector<1x32x256xbf16>
    %7 = vector.shape_cast %6 : vector<1x32x256xbf16> to vector<32x256xbf16>
    %c0_3 = arith.constant 0 : index
    %c0_4 = arith.constant 0 : index
    %8 = arith.index_cast %4 : i32 to index
    %9 = vector.load %arg7[%c0_3, %c0_4, %8] : memref<1x32x256xbf16, #tpu.memory_space<vmem>>, vector<1x32x256xbf16>
    %10 = vector.shape_cast %9 : vector<1x32x256xbf16> to vector<32x256xbf16>
    %c0_5 = arith.constant 0 : index
    %c0_6 = arith.constant 0 : index
    %11 = vector.load %arg13[%c0_5, %c0_6] : memref<32x256xbf16, #tpu.memory_space<vmem>>, vector<32x256xbf16>
    %cst = arith.constant dense<0.000000e+00> : vector<256x256xf32>
    %12 = tpu.matmul %7, %11, %cst {dimension_numbers = #tpu.dot_dimension_numbers<[0], [0], [1], [1], [0, 1, 1, 1], [], []>} : vector<32x256xbf16>, vector<32x256xbf16>, vector<256x256xf32> -> vector<256x256xf32>
    %c0_7 = arith.constant 0 : index
    %c0_8 = arith.constant 0 : index
    %13 = vector.load %arg14[%c0_7, %c0_8] : memref<1x256xf32, #tpu.memory_space<vmem>>, vector<1x256xf32>
    %cst_9 = arith.constant dense<0xFF800000> : vector<256xf32>
    %14 = vector.multi_reduction <maximumf>, %12, %cst_9 [0] : vector<256x256xf32> to vector<256xf32>
    %15 = vector.shape_cast %14 : vector<256xf32> to vector<1x256xf32>
    %16 = arith.maximumf %13, %15 : vector<1x256xf32>
    %17 = arith.subf %13, %16 : vector<1x256xf32>
    %18 = math.exp %17 : vector<1x256xf32>
    %19 = vector.broadcast %16 : vector<1x256xf32> to vector<256x256xf32>
    %20 = arith.subf %12, %19 : vector<256x256xf32>
    %21 = math.exp %20 : vector<256x256xf32>
    %c0_10 = arith.constant 0 : index
    %c0_11 = arith.constant 0 : index
    %22 = vector.load %arg15[%c0_10, %c0_11] : memref<1x256xf32, #tpu.memory_space<vmem>>, vector<1x256xf32>
    %23 = arith.mulf %18, %22 : vector<1x256xf32>
    %cst_12 = arith.constant dense<0.000000e+00> : vector<256xf32>
    %24 = vector.multi_reduction <add>, %21, %cst_12 [0] : vector<256x256xf32> to vector<256xf32>
    %25 = vector.shape_cast %24 : vector<256xf32> to vector<1x256xf32>
    %26 = arith.addf %23, %25 : vector<1x256xf32>
    %c0_13 = arith.constant 0 : index
    %c0_14 = arith.constant 0 : index
    %27 = vector.load %arg15[%c0_13, %c0_14] : memref<1x256xf32, #tpu.memory_space<vmem>>, vector<1x256xf32>
    tpu.vector_store %arg15[%c0_13, %c0_14], %26 {strides = array<i32>} : memref<1x256xf32, #tpu.memory_space<vmem>>, vector<1x256xf32>,
    %c0_15 = arith.constant 0 : index
    %c0_16 = arith.constant 0 : index
    %28 = vector.load %arg16[%c0_15, %c0_16] : memref<32x256xf32, #tpu.memory_space<vmem>>, vector<32x256xf32>
    %29 = vector.broadcast %18 : vector<1x256xf32> to vector<32x256xf32>
    %30 = arith.mulf %29, %28 : vector<32x256xf32>
    %31 = arith.truncf %21 : vector<256x256xf32> to vector<256x256xbf16>
    %cst_17 = arith.constant dense<0.000000e+00> : vector<32x256xf32>
    %32 = tpu.matmul %10, %31, %cst_17 {dimension_numbers = #tpu.dot_dimension_numbers<[1], [0], [0], [1], [0, 0, 1, 1], [], []>} : vector<32x256xbf16>, vector<256x256xbf16>, vector<32x256xf32> -> vector<32x256xf32>
    %33 = arith.addf %30, %32 : vector<32x256xf32>
    %c0_18 = arith.constant 0 : index
    %c0_19 = arith.constant 0 : index
    %34 = vector.load %arg16[%c0_18, %c0_19] : memref<32x256xf32, #tpu.memory_space<vmem>>, vector<32x256xf32>
    tpu.vector_store %arg16[%c0_18, %c0_19], %33 {strides = array<i32>} : memref<32x256xf32, #tpu.memory_space<vmem>>, vector<32x256xf32>,
    %c0_20 = arith.constant 0 : index
    %c0_21 = arith.constant 0 : index
    %35 = vector.load %arg14[%c0_20, %c0_21] : memref<1x256xf32, #tpu.memory_space<vmem>>, vector<1x256xf32>
    tpu.vector_store %arg14[%c0_20, %c0_21], %16 {strides = array<i32>} : memref<1x256xf32, #tpu.memory_space<vmem>>, vector<1x256xf32>,
    %c1_i32 = arith.constant 1 : i32
    %c0_i32_22 = arith.constant 0 : i32
    %36 = arith.cmpi eq, %arg2, %c0_i32_22 : i32
    %37 = arith.extui %36 : i1 to i32
    %c0_i32_23 = arith.constant 0 : i32
    %38 = arith.cmpi ne, %37, %c0_i32_23 : i32
    scf.if %38 {
      %c0_24 = arith.constant 0 : index
      %c0_25 = arith.constant 0 : index
      %39 = vector.load %arg16[%c0_24, %c0_25] : memref<32x256xf32, #tpu.memory_space<vmem>>, vector<32x256xf32>
      %c0_26 = arith.constant 0 : index
      %c0_27 = arith.constant 0 : index
      %40 = vector.load %arg15[%c0_26, %c0_27] : memref<1x256xf32, #tpu.memory_space<vmem>>, vector<1x256xf32>
      %41 = tpu.reciprocal %40 {approx = true} : vector<1x256xf32> -> vector<1x256xf32>
      %42 = vector.broadcast %41 : vector<1x256xf32> to vector<32x256xf32>
      %43 = arith.mulf %39, %42 : vector<32x256xf32>
      %c0_28 = arith.constant 0 : index
      %c0_29 = arith.constant 0 : index
      %44 = vector.load %arg10[%c0_28, %c0_29] : memref<32x32xbf16, #tpu.memory_space<vmem>>, vector<32x32xbf16>
      %45 = arith.truncf %43 : vector<32x256xf32> to vector<32x256xbf16>
      %cst_30 = arith.constant dense<0.000000e+00> : vector<32x256xf32>
      %46 = tpu.matmul %44, %45, %cst_30 {dimension_numbers = #tpu.dot_dimension_numbers<[1], [0], [0], [1], [0, 0, 1, 1], [], []>} : vector<32x32xbf16>, vector<32x256xbf16>, vector<32x256xf32> -> vector<32x256xf32>
      %c0_31 = arith.constant 0 : index
      %c0_32 = arith.constant 0 : index
      %c0_33 = arith.constant 0 : index
      %47 = vector.load %arg3[%c0_31, %c0_32, %c0_33] : memref<1x32x256xf32, #tpu.memory_space<vmem>>, vector<1x32x256xf32>
      %48 = vector.shape_cast %47 : vector<1x32x256xf32> to vector<32x256xf32>
      %49 = arith.addf %48, %46 : vector<32x256xf32>
      %c0_34 = arith.constant 0 : index
      %c0_35 = arith.constant 0 : index
      %50 = vector.load %arg11[%c0_34, %c0_35] : memref<32x1xf32, #tpu.memory_space<vmem>>, vector<32x1xf32>
      %51 = vector.broadcast %50 : vector<32x1xf32> to vector<32x256xf32>
      %52 = arith.addf %49, %51 : vector<32x256xf32>
      %c0_36 = arith.constant 0 : index
      %c0_37 = arith.constant 0 : index
      %c0_38 = arith.constant 0 : index
      %53 = vector.load %arg12[%c0_36, %c0_37, %c0_38] : memref<1x32x256xf32, #tpu.memory_space<vmem>>, vector<1x32x256xf32>
      %54 = vector.shape_cast %53 : vector<1x32x256xf32> to vector<32x256xf32>
      %55 = vector.shape_cast %52 : vector<32x256xf32> to vector<1x32x256xf32>
      tpu.vector_store %arg12[%c0_36, %c0_37, %c0_38], %55 {strides = array<i32>} : memref<1x32x256xf32, #tpu.memory_space<vmem>>, vector<1x32x256xf32>,
    } else {
    }
    return
  }
  func.func @transform_0(%arg0: i32, %arg1: i32, %arg2: i32) -> (i32, i32, i32) {
    %c0_i32 = arith.constant 0 : i32
    %c0_i32_0 = arith.constant 0 : i32
    return %arg0, %c0_i32, %arg1 : i32, i32, i32
  }
  func.func @transform_1(%arg0: i32, %arg1: i32, %arg2: i32) -> (i32, i32, i32) {
    %c0_i32 = arith.constant 0 : i32
    %c0_i32_0 = arith.constant 0 : i32
    %c0_i32_1 = arith.constant 0 : i32
    return %arg0, %c0_i32, %c0_i32_0 : i32, i32, i32
  }
  func.func @transform_2(%arg0: i32, %arg1: i32, %arg2: i32) -> (i32, i32, i32) {
    %c0_i32 = arith.constant 0 : i32
    %c0_i32_0 = arith.constant 0 : i32
    %c0_i32_1 = arith.constant 0 : i32
    return %arg0, %c0_i32, %c0_i32_0 : i32, i32, i32
  }
  func.func @transform_3(%arg0: i32, %arg1: i32, %arg2: i32) -> (i32, i32, i32) {
    %c0_i32 = arith.constant 0 : i32
    %c0_i32_0 = arith.constant 0 : i32
    return %arg0, %c0_i32, %arg2 : i32, i32, i32
  }
  func.func @transform_4(%arg0: i32, %arg1: i32, %arg2: i32) -> (i32, i32, i32) {
    %c0_i32 = arith.constant 0 : i32
    %c0_i32_0 = arith.constant 0 : i32
    return %arg0, %c0_i32, %arg2 : i32, i32, i32
  }
  func.func @transform_5(%arg0: i32, %arg1: i32, %arg2: i32) -> (i32, i32) {
    %c0_i32 = arith.constant 0 : i32
    %c0_i32_0 = arith.constant 0 : i32
    %c0_i32_1 = arith.constant 0 : i32
    return %c0_i32, %c0_i32_0 : i32, i32
  }
  func.func @transform_6(%arg0: i32, %arg1: i32, %arg2: i32) -> (i32, i32) {
    %c0_i32 = arith.constant 0 : i32
    %c0_i32_0 = arith.constant 0 : i32
    %c0_i32_1 = arith.constant 0 : i32
    return %c0_i32, %c0_i32_0 : i32, i32
  }
  func.func @transform_7(%arg0: i32, %arg1: i32, %arg2: i32) -> (i32, i32) {
    %c0_i32 = arith.constant 0 : i32
    %c0_i32_0 = arith.constant 0 : i32
    %c0_i32_1 = arith.constant 0 : i32
    return %c0_i32, %c0_i32_0 : i32, i32
  }
  func.func @transform_8(%arg0: i32, %arg1: i32, %arg2: i32) -> (i32, i32) {
    %c0_i32 = arith.constant 0 : i32
    %c0_i32_0 = arith.constant 0 : i32
    %c0_i32_1 = arith.constant 0 : i32
    return %c0_i32, %c0_i32_0 : i32, i32
  }
  func.func @transform_9(%arg0: i32, %arg1: i32, %arg2: i32) -> (i32, i32, i32) {
    %c0_i32 = arith.constant 0 : i32
    %c0_i32_0 = arith.constant 0 : i32
    return %arg0, %c0_i32, %arg1 : i32, i32, i32
  }
}

module attributes {stable_mosaic.version = 11 : i64} {
  func.func @_gn_stats_kernel(%arg0: i32, %arg1: i32, %arg2: memref<1x32x256xf32, #tpu.memory_space<vmem>>, %arg3: memref<1x32x1xf32, #tpu.memory_space<vmem>>, %arg4: memref<1x32x1xf32, #tpu.memory_space<vmem>>) attributes {dimension_semantics = [#tpu.dimension_semantics<parallel>, #tpu.dimension_semantics<arbitrary>], iteration_bounds = array<i64: 2, 1>, scalar_prefetch = 0 : i64, scratch_operands = 0 : i64, tpu.core_type = #tpu.core_type<tc>, window_params = [{transform_indices = @transform_0, window_bounds = array<i64: 1, 32, 256>}, {transform_indices = @transform_1, window_bounds = array<i64: 1, 32, 1>}, {transform_indices = @transform_2, window_bounds = array<i64: 1, 32, 1>}]} {
    %c0_i32 = arith.constant 0 : i32
    %0 = arith.cmpi eq, %arg1, %c0_i32 : i32
    %1 = arith.extui %0 : i1 to i32
    %c0_i32_0 = arith.constant 0 : i32
    %2 = arith.cmpi ne, %1, %c0_i32_0 : i32
    scf.if %2 {
      %cst_16 = arith.constant 0.000000e+00 : f32
      %22 = vector.broadcast %cst_16 : f32 to vector<1x32x1xf32>
      %c0_17 = arith.constant 0 : index
      %c0_18 = arith.constant 0 : index
      %c0_19 = arith.constant 0 : index
      %23 = vector.load %arg3[%c0_17, %c0_18, %c0_19] : memref<1x32x1xf32, #tpu.memory_space<vmem>>, vector<1x32x1xf32>
      tpu.vector_store %arg3[%c0_17, %c0_18, %c0_19], %22 {strides = array<i32>} : memref<1x32x1xf32, #tpu.memory_space<vmem>>, vector<1x32x1xf32>,
      %cst_20 = arith.constant 0.000000e+00 : f32
      %24 = vector.broadcast %cst_20 : f32 to vector<1x32x1xf32>
      %c0_21 = arith.constant 0 : index
      %c0_22 = arith.constant 0 : index
      %c0_23 = arith.constant 0 : index
      %25 = vector.load %arg4[%c0_21, %c0_22, %c0_23] : memref<1x32x1xf32, #tpu.memory_space<vmem>>, vector<1x32x1xf32>
      tpu.vector_store %arg4[%c0_21, %c0_22, %c0_23], %24 {strides = array<i32>} : memref<1x32x1xf32, #tpu.memory_space<vmem>>, vector<1x32x1xf32>,
    } else {
    }
    %c0 = arith.constant 0 : index
    %c0_1 = arith.constant 0 : index
    %c0_2 = arith.constant 0 : index
    %3 = vector.load %arg2[%c0, %c0_1, %c0_2] : memref<1x32x256xf32, #tpu.memory_space<vmem>>, vector<1x32x256xf32>
    %4 = vector.shape_cast %3 : vector<1x32x256xf32> to vector<32x256xf32>
    %c0_3 = arith.constant 0 : index
    %c0_4 = arith.constant 0 : index
    %c0_5 = arith.constant 0 : index
    %5 = vector.load %arg3[%c0_3, %c0_4, %c0_5] : memref<1x32x1xf32, #tpu.memory_space<vmem>>, vector<1x32x1xf32>
    %6 = vector.shape_cast %5 : vector<1x32x1xf32> to vector<32x1xf32>
    %cst = arith.constant dense<0.000000e+00> : vector<32xf32>
    %7 = vector.multi_reduction <add>, %4, %cst [1] : vector<32x256xf32> to vector<32xf32>
    %8 = vector.shape_cast %7 : vector<32xf32> to vector<32x1xf32>
    %9 = arith.addf %6, %8 : vector<32x1xf32>
    %c0_6 = arith.constant 0 : index
    %c0_7 = arith.constant 0 : index
    %c0_8 = arith.constant 0 : index
    %10 = vector.load %arg3[%c0_6, %c0_7, %c0_8] : memref<1x32x1xf32, #tpu.memory_space<vmem>>, vector<1x32x1xf32>
    %11 = vector.shape_cast %10 : vector<1x32x1xf32> to vector<32x1xf32>
    %12 = vector.shape_cast %9 : vector<32x1xf32> to vector<1x32x1xf32>
    tpu.vector_store %arg3[%c0_6, %c0_7, %c0_8], %12 {strides = array<i32>} : memref<1x32x1xf32, #tpu.memory_space<vmem>>, vector<1x32x1xf32>,
    %c0_9 = arith.constant 0 : index
    %c0_10 = arith.constant 0 : index
    %c0_11 = arith.constant 0 : index
    %13 = vector.load %arg4[%c0_9, %c0_10, %c0_11] : memref<1x32x1xf32, #tpu.memory_space<vmem>>, vector<1x32x1xf32>
    %14 = vector.shape_cast %13 : vector<1x32x1xf32> to vector<32x1xf32>
    %15 = arith.mulf %4, %4 : vector<32x256xf32>
    %cst_12 = arith.constant dense<0.000000e+00> : vector<32xf32>
    %16 = vector.multi_reduction <add>, %15, %cst_12 [1] : vector<32x256xf32> to vector<32xf32>
    %17 = vector.shape_cast %16 : vector<32xf32> to vector<32x1xf32>
    %18 = arith.addf %14, %17 : vector<32x1xf32>
    %c0_13 = arith.constant 0 : index
    %c0_14 = arith.constant 0 : index
    %c0_15 = arith.constant 0 : index
    %19 = vector.load %arg4[%c0_13, %c0_14, %c0_15] : memref<1x32x1xf32, #tpu.memory_space<vmem>>, vector<1x32x1xf32>
    %20 = vector.shape_cast %19 : vector<1x32x1xf32> to vector<32x1xf32>
    %21 = vector.shape_cast %18 : vector<32x1xf32> to vector<1x32x1xf32>
    tpu.vector_store %arg4[%c0_13, %c0_14, %c0_15], %21 {strides = array<i32>} : memref<1x32x1xf32, #tpu.memory_space<vmem>>, vector<1x32x1xf32>,
    return
  }
  func.func @transform_0(%arg0: i32, %arg1: i32) -> (i32, i32, i32) {
    %c0_i32 = arith.constant 0 : i32
    %c0_i32_0 = arith.constant 0 : i32
    return %arg0, %c0_i32, %arg1 : i32, i32, i32
  }
  func.func @transform_1(%arg0: i32, %arg1: i32) -> (i32, i32, i32) {
    %c0_i32 = arith.constant 0 : i32
    %c0_i32_0 = arith.constant 0 : i32
    %c0_i32_1 = arith.constant 0 : i32
    return %arg0, %c0_i32, %c0_i32_0 : i32, i32, i32
  }
  func.func @transform_2(%arg0: i32, %arg1: i32) -> (i32, i32, i32) {
    %c0_i32 = arith.constant 0 : i32
    %c0_i32_0 = arith.constant 0 : i32
    %c0_i32_1 = arith.constant 0 : i32
    return %arg0, %c0_i32, %c0_i32_0 : i32, i32, i32
  }
}

module attributes {stable_mosaic.version = 11 : i64} {
  func.func @_kv_kernel(%arg0: i32, %arg1: i32, %arg2: memref<1x32x256xf32, #tpu.memory_space<vmem>>, %arg3: memref<1x32x1xf32, #tpu.memory_space<vmem>>, %arg4: memref<1x32x1xf32, #tpu.memory_space<vmem>>, %arg5: memref<64x32xbf16, #tpu.memory_space<vmem>>, %arg6: memref<64x1xf32, #tpu.memory_space<vmem>>, %arg7: memref<1x32x256xbf16, #tpu.memory_space<vmem>>, %arg8: memref<1x32x256xbf16, #tpu.memory_space<vmem>>) attributes {dimension_semantics = [#tpu.dimension_semantics<parallel>, #tpu.dimension_semantics<parallel>], iteration_bounds = array<i64: 2, 1>, scalar_prefetch = 0 : i64, scratch_operands = 0 : i64, tpu.core_type = #tpu.core_type<tc>, window_params = [{transform_indices = @transform_0, window_bounds = array<i64: 1, 32, 256>}, {transform_indices = @transform_1, window_bounds = array<i64: 1, 32, 1>}, {transform_indices = @transform_2, window_bounds = array<i64: 1, 32, 1>}, {pipeline_mode = #tpu.pipeline_mode<synchronous>, transform_indices = @transform_3, window_bounds = array<i64: 64, 32>}, {pipeline_mode = #tpu.pipeline_mode<synchronous>, transform_indices = @transform_4, window_bounds = array<i64: 64, 1>}, {transform_indices = @transform_5, window_bounds = array<i64: 1, 32, 256>}, {transform_indices = @transform_6, window_bounds = array<i64: 1, 32, 256>}]} {
    %c0 = arith.constant 0 : index
    %c0_0 = arith.constant 0 : index
    %c0_1 = arith.constant 0 : index
    %0 = vector.load %arg2[%c0, %c0_0, %c0_1] : memref<1x32x256xf32, #tpu.memory_space<vmem>>, vector<1x32x256xf32>
    %1 = vector.shape_cast %0 : vector<1x32x256xf32> to vector<32x256xf32>
    %c0_2 = arith.constant 0 : index
    %c0_3 = arith.constant 0 : index
    %c0_4 = arith.constant 0 : index
    %2 = vector.load %arg3[%c0_2, %c0_3, %c0_4] : memref<1x32x1xf32, #tpu.memory_space<vmem>>, vector<1x32x1xf32>
    %3 = vector.shape_cast %2 : vector<1x32x1xf32> to vector<32x1xf32>
    %4 = vector.broadcast %3 : vector<32x1xf32> to vector<32x256xf32>
    %5 = arith.mulf %1, %4 : vector<32x256xf32>
    %c0_5 = arith.constant 0 : index
    %c0_6 = arith.constant 0 : index
    %c0_7 = arith.constant 0 : index
    %6 = vector.load %arg4[%c0_5, %c0_6, %c0_7] : memref<1x32x1xf32, #tpu.memory_space<vmem>>, vector<1x32x1xf32>
    %7 = vector.shape_cast %6 : vector<1x32x1xf32> to vector<32x1xf32>
    %8 = vector.broadcast %7 : vector<32x1xf32> to vector<32x256xf32>
    %9 = arith.addf %5, %8 : vector<32x256xf32>
    %10 = arith.truncf %9 : vector<32x256xf32> to vector<32x256xbf16>
    %c0_8 = arith.constant 0 : index
    %c0_9 = arith.constant 0 : index
    %11 = vector.load %arg5[%c0_8, %c0_9] : memref<64x32xbf16, #tpu.memory_space<vmem>>, vector<64x32xbf16>
    %cst = arith.constant dense<0.000000e+00> : vector<64x256xf32>
    %12 = tpu.matmul %11, %10, %cst {dimension_numbers = #tpu.dot_dimension_numbers<[1], [0], [0], [1], [0, 0, 1, 1], [], []>} : vector<64x32xbf16>, vector<32x256xbf16>, vector<64x256xf32> -> vector<64x256xf32>
    %c0_10 = arith.constant 0 : index
    %c0_11 = arith.constant 0 : index
    %13 = vector.load %arg6[%c0_10, %c0_11] : memref<64x1xf32, #tpu.memory_space<vmem>>, vector<64x1xf32>
    %14 = vector.broadcast %13 : vector<64x1xf32> to vector<64x256xf32>
    %15 = arith.addf %12, %14 : vector<64x256xf32>
    %16 = vector.extract_strided_slice %15 {offsets = [0, 0], sizes = [32, 256], strides = [1, 1]} : vector<64x256xf32> to vector<32x256xf32>
    %17 = arith.truncf %16 : vector<32x256xf32> to vector<32x256xbf16>
    %c0_12 = arith.constant 0 : index
    %c0_13 = arith.constant 0 : index
    %c0_14 = arith.constant 0 : index
    %18 = vector.load %arg7[%c0_12, %c0_13, %c0_14] : memref<1x32x256xbf16, #tpu.memory_space<vmem>>, vector<1x32x256xbf16>
    %19 = vector.shape_cast %18 : vector<1x32x256xbf16> to vector<32x256xbf16>
    %20 = vector.shape_cast %17 : vector<32x256xbf16> to vector<1x32x256xbf16>
    tpu.vector_store %arg7[%c0_12, %c0_13, %c0_14], %20 {strides = array<i32>} : memref<1x32x256xbf16, #tpu.memory_space<vmem>>, vector<1x32x256xbf16>,
    %21 = vector.extract_strided_slice %15 {offsets = [32, 0], sizes = [32, 256], strides = [1, 1]} : vector<64x256xf32> to vector<32x256xf32>
    %22 = arith.truncf %21 : vector<32x256xf32> to vector<32x256xbf16>
    %c0_15 = arith.constant 0 : index
    %c0_16 = arith.constant 0 : index
    %c0_17 = arith.constant 0 : index
    %23 = vector.load %arg8[%c0_15, %c0_16, %c0_17] : memref<1x32x256xbf16, #tpu.memory_space<vmem>>, vector<1x32x256xbf16>
    %24 = vector.shape_cast %23 : vector<1x32x256xbf16> to vector<32x256xbf16>
    %25 = vector.shape_cast %22 : vector<32x256xbf16> to vector<1x32x256xbf16>
    tpu.vector_store %arg8[%c0_15, %c0_16, %c0_17], %25 {strides = array<i32>} : memref<1x32x256xbf16, #tpu.memory_space<vmem>>, vector<1x32x256xbf16>,
    return
  }
  func.func @transform_0(%arg0: i32, %arg1: i32) -> (i32, i32, i32) {
    %c0_i32 = arith.constant 0 : i32
    %c0_i32_0 = arith.constant 0 : i32
    return %arg0, %c0_i32, %arg1 : i32, i32, i32
  }
  func.func @transform_1(%arg0: i32, %arg1: i32) -> (i32, i32, i32) {
    %c0_i32 = arith.constant 0 : i32
    %c0_i32_0 = arith.constant 0 : i32
    %c0_i32_1 = arith.constant 0 : i32
    return %arg0, %c0_i32, %c0_i32_0 : i32, i32, i32
  }
  func.func @transform_2(%arg0: i32, %arg1: i32) -> (i32, i32, i32) {
    %c0_i32 = arith.constant 0 : i32
    %c0_i32_0 = arith.constant 0 : i32
    %c0_i32_1 = arith.constant 0 : i32
    return %arg0, %c0_i32, %c0_i32_0 : i32, i32, i32
  }
  func.func @transform_3(%arg0: i32, %arg1: i32) -> (i32, i32) {
    %c0_i32 = arith.constant 0 : i32
    %c0_i32_0 = arith.constant 0 : i32
    %c0_i32_1 = arith.constant 0 : i32
    return %c0_i32, %c0_i32_0 : i32, i32
  }
  func.func @transform_4(%arg0: i32, %arg1: i32) -> (i32, i32) {
    %c0_i32 = arith.constant 0 : i32
    %c0_i32_0 = arith.constant 0 : i32
    %c0_i32_1 = arith.constant 0 : i32
    return %c0_i32, %c0_i32_0 : i32, i32
  }
  func.func @transform_5(%arg0: i32, %arg1: i32) -> (i32, i32, i32) {
    %c0_i32 = arith.constant 0 : i32
    %c0_i32_0 = arith.constant 0 : i32
    return %arg0, %c0_i32, %arg1 : i32, i32, i32
  }
  func.func @transform_6(%arg0: i32, %arg1: i32) -> (i32, i32, i32) {
    %c0_i32 = arith.constant 0 : i32
    %c0_i32_0 = arith.constant 0 : i32
    return %arg0, %c0_i32, %arg1 : i32, i32, i32
  }
}

</mosaic_0001>

<bundles_post_ra>
// kernel: nonlocal_block_pallas.3
= control target key start
LH: loop header
LB: loop body
LE: loop exit
PB: predicated region body
PF: predicated region fallthrough
CT: control target
= control target key end

     0   :  { %s446_s9 = smov 0   ;;  %s448_s10 = smov 0   ;;  %s526_s0 = inlined_call_operand.vmem [shape: f32[2,32,256], index: 0, kind: input, shape index: {}]   ;;  %s527_s1 = inlined_call_operand.vmem [shape: f32[2,32,1], index: 1, kind: output, shape index: {0}]   ;;  %s528_s2 = inlined_call_operand.vmem [shape: f32[2,32,1], index: 2, kind: output, shape index: {1}]  }
   0x1   :  { %s450_s11 = smov 0  }
   0x2 LB: > { %s25_s12 = sadd.s32 1, %s424_s10  ;;  %p369_p0 = scmp.ge.s32.totalorder %s428_s11, 1  ;;  %s428_s11 = sphi %s450_s11, %s13_s11   ;;  %s424_s10 = sphi %s448_s10, %s530_s10   ;;  %s420_s9 = sphi %s446_s9, %s529_s9  }
   0x3   : > { %p27_p1 = scmp.ge.s32.totalorder %s25_s12, 2  ;;  %p134_p2 = scmp.lt.s32.totalorder %s428_s11, 3 }
   0x5   : > { %s532_s12 = smov (%p27_p1, %s25_s12), 0  ;;  %p135_p3 = pnand %p369_p0, %p134_p2 }
   0x6   : > { %p166_p4 = scmp.lt.s32.totalorder (!%p135_p3), %s420_s9, 1 }
   0x7   : > { %138 = sbr.rel (%p135_p3) target bundleno = 154 (0x9a), region = 24 }
   0xc   : > { %s534_s9 = smov (!%p166_p4, %s420_s9), 1  ;;  %vm189_vm0 = vcmask 7168   ;;  %v430_v3 = vmov 0.0  }
   0xd   : > { %s378_s13 = sshll.u32 %s534_s9, 6  ;;  %s379_s14 = sshll.u32 %s534_s9, 5 }
   0xe   : > { %s173_s17 = scalar_lea.vmem %s526_s0, %s378_s13  ;;  %s470_s20 = scalar_lea.vmem %s527_s1, %s379_s14 }
   0xf   : > { %v202_v0 = vld [vmem:[%s173_s17 + $0x20] sm:$0xff]  ;;  %v203_v1 = vld [vmem:[%s173_s17 + $0x28] sm:$0xff]  ;;  %192 = vst.msk [vmem:[%s470_s20 + $0x10] sm:$0xff] %vm189_vm0, %v430_v3  ;;  %s479_s23 = scalar_lea.vmem %s528_s2, %s379_s14  ;;  %v204_v9 = vld [vmem:[%s173_s17 + $0x30] sm:$0xff] }
  0x10   : > { %v198_v2 = vld [vmem:[%s173_s17] sm:$0xff]  ;;  %v216_v4 = vadd.f32 %v203_v1, %v202_v0  ;;  %v199_v5 = vld [vmem:[%s173_s17 + $0x8] sm:$0xff]  ;;  %190 = vst.msk [vmem:[%s470_s20] sm:$0xff] %vm189_vm0, %v430_v3  ;;  %v205_v10 = vld [vmem:[%s173_s17 + $0x38] sm:$0xff]  ;;  %v241_v19 = vmul.f32 %v204_v9, %v204_v9  ;;  %v239_v21 = vmul.f32 %v202_v0, %v202_v0  ;;  %v240_v22 = vmul.f32 %v203_v1, %v203_v1 }
  0x11   : > { %v235_v6 = vmul.f32 %v198_v2, %v198_v2  ;;  %v210_v7 = vadd.f32 %v199_v5, %v198_v2  ;;  %v236_v8 = vmul.f32 %v199_v5, %v199_v5  ;;  %191 = vst.msk [vmem:[%s470_s20 + $0x8] sm:$0xff] %vm189_vm0, %v430_v3  ;;  %v200_v12 = vld [vmem:[%s173_s17 + $0x10] sm:$0xff]  ;;  %v201_v13 = vld [vmem:[%s173_s17 + $0x18] sm:$0xff]  ;;  %v219_v16 = vadd.f32 %v205_v10, %v204_v9 }
  0x12   : > { %217 = vadd.xlane.f32.xlu1 %v216_v4  ;;  %193 = vst.msk [vmem:[%s470_s20 + $0x18] sm:$0xff] %vm189_vm0, %v430_v3  ;;  %v237_v14 = vmul.f32 %v200_v12, %v200_v12  ;;  %v238_v15 = vmul.f32 %v201_v13, %v201_v13  ;;  %v213_v17 = vadd.f32 %v201_v13, %v200_v12 }
  0x13   : > { %211 = vadd.xlane.f32.xlu0 %v210_v7  ;;  %v243_v11 = vadd.f32 %v236_v8, %v235_v6  ;;  %194 = vst.msk [vmem:[%s479_s23] sm:$0xff] %vm189_vm0, %v430_v3  ;;  %v242_v20 = vmul.f32 %v205_v10, %v205_v10  ;;  %v249_v24 = vadd.f32 %v240_v22, %v239_v21 }
  0x14   : > { %195 = vst.msk [vmem:[%s479_s23 + $0x8] sm:$0xff] %vm189_vm0, %v430_v3  ;;  %v246_v18 = vadd.f32 %v238_v15, %v237_v14 }
  0x15   : > { %244 = vadd.xlane.f32.xlu2 %v243_v11  ;;  %196 = vst.msk [vmem:[%s479_s23 + $0x10] sm:$0xff] %vm189_vm0, %v430_v3  ;;  %v252_v23 = vadd.f32 %v242_v20, %v241_v19 }
  0x16   : > { %197 = vst.msk [vmem:[%s479_s23 + $0x18] sm:$0xff] %vm189_vm0, %v430_v3  ;;  %v208_v25 = vld [vmem:[%s470_s20 + $0x10] sm:$0xff] }
  0x17   : > { %v206_v26 = vld [vmem:[%s470_s20] sm:$0xff] }
  0x18   : > { %v207_v35 = vld [vmem:[%s470_s20 + $0x8] sm:$0xff] }
  0x19   : > { %v209_v34 = vld [vmem:[%s470_s20 + $0x18] sm:$0xff] }
  0x1a   : > { %220 = vadd.xlane.f32.xlu1 %v219_v16  ;;  %v231_v30 = vld [vmem:[%s479_s23] sm:$0xff] }
  0x1b   : > { %214 = vadd.xlane.f32.xlu0 %v213_v17  ;;  %v232_v39 = vld [vmem:[%s479_s23 + $0x8] sm:$0xff] }
  0x1c   : > { %v233_v44 = vld [vmem:[%s479_s23 + $0x10] sm:$0xff] }
  0x1d   : > { %247 = vadd.xlane.f32.xlu2 %v246_v18  ;;  %v234_v43 = vld [vmem:[%s479_s23 + $0x18] sm:$0xff] }
  0x22   : > { %253 = vadd.xlane.f32.xlu1 %v252_v23 }
  0x23   : > { %250 = vadd.xlane.f32.xlu0 %v249_v24 }
  0x85   : > { %v218_v27 = vpop.xlane.xlu1 %217 }
  0x86   : > { %v224_v28 = vadd.f32 %v218_v27, %v208_v25  ;;  %v212_v29 = vpop.xlane.xlu0 %211 }
  0x87   : > { %v222_v31 = vadd.f32 %v212_v29, %v206_v26 }
  0x88   : > { %229 = vst.msk [vmem:[%s470_s20 + $0x10] sm:$0xff] %vm189_vm0, %v224_v28  ;;  %v245_v32 = vpop.xlane.xlu2 %244 }
  0x89   : > { %227 = vst.msk [vmem:[%s470_s20] sm:$0xff] %vm189_vm0, %v222_v31  ;;  %v255_v33 = vadd.f32 %v245_v32, %v231_v30 }
  0x8b   : > { %259 = vst.msk [vmem:[%s479_s23] sm:$0xff] %vm189_vm0, %v255_v33 }
  0x8d   : > { %v221_v36 = vpop.xlane.xlu1 %220 }
  0x8e   : > { %v225_v37 = vadd.f32 %v221_v36, %v209_v34  ;;  %v215_v38 = vpop.xlane.xlu0 %214 }
  0x8f   : > { %v223_v40 = vadd.f32 %v215_v38, %v207_v35 }
  0x90   : > { %230 = vst.msk [vmem:[%s470_s20 + $0x18] sm:$0xff] %vm189_vm0, %v225_v37  ;;  %v248_v41 = vpop.xlane.xlu2 %247 }
  0x91   : > { %228 = vst.msk [vmem:[%s470_s20 + $0x8] sm:$0xff] %vm189_vm0, %v223_v40  ;;  %v256_v42 = vadd.f32 %v248_v41, %v232_v39 }
  0x93   : > { %260 = vst.msk [vmem:[%s479_s23 + $0x8] sm:$0xff] %vm189_vm0, %v256_v42 }
  0x95   : > { %v254_v45 = vpop.xlane.xlu1 %253 }
  0x96   : > { %v258_v46 = vadd.f32 %v254_v45, %v234_v43  ;;  %v251_v47 = vpop.xlane.xlu0 %250 }
  0x97   : > { %v257_v48 = vadd.f32 %v251_v47, %v233_v44 }
  0x98   : > { %262 = vst.msk [vmem:[%s479_s23 + $0x18] sm:$0xff] %vm189_vm0, %v258_v46 }
  0x99   : > { %261 = vst.msk [vmem:[%s479_s23 + $0x10] sm:$0xff] %vm189_vm0, %v257_v48 }
  0x9a PF: > { %s13_s11 = sadd.s32 1, %s428_s11   ;;  %s529_s9 = smov %s424_s10 }
  0x9b   : > { %p10_p5 = scmp.ge.s32.totalorder %s13_s11, 4   ;;  %s530_s10 = smov %s532_s12 }
  0x9d   :  { %12 = sbr.rel (!%p10_p5) target bundleno = 2 (0x2), region = 70 }

// kernel: nonlocal_block_pallas.4
= control target key start
LH: loop header
LB: loop body
LE: loop exit
PB: predicated region body
PF: predicated region fallthrough
CT: control target
= control target key end

     0   :  { %s898_s21 = smov 0   ;;  %s900_s22 = smov 0   ;;  %s998_s0 = inlined_call_operand.vmem [shape: f32[2,32,256], index: 0, kind: input, shape index: {}]   ;;  %s999_s1 = inlined_call_operand.vmem [shape: f32[2,32,1], index: 1, kind: input, shape index: {}]   ;;  %s1000_s2 = inlined_call_operand.vmem [shape: f32[2,32,1], index: 2, kind: input, shape index: {}]   ;;  %s1001_s3 = inlined_call_operand.vmem [shape: bf16[64,32], index: 3, kind: input, shape index: {}]   ;;  %s1002_s4 = inlined_call_operand.vmem [shape: f32[64,1], index: 4, kind: input, shape index: {}]   ;;  %s1003_s5 = inlined_call_operand.vmem [shape: bf16[2,32,256], index: 5, kind: output, shape index: {0}]   ;;  %s1004_s6 = inlined_call_operand.vmem [shape: bf16[2,32,256], index: 6, kind: output, shape index: {1}]  }
   0x1   :  { %s902_s23 = smov 0  }
   0x2 LB: > { %s29_s24 = sadd.s32 1, %s856_s22  ;;  %p760_p0 = scmp.ge.s32.totalorder %s860_s23, 1  ;;  %s860_s23 = sphi %s902_s23, %s17_s23   ;;  %s856_s22 = sphi %s900_s22, %s1006_s22   ;;  %s852_s21 = sphi %s898_s21, %s1005_s21  }
   0x3   : > { %p31_p1 = scmp.ge.s32.totalorder %s29_s24, 2  ;;  %p258_p2 = scmp.lt.s32.totalorder %s860_s23, 3 }
   0x5   : > { %s1008_s24 = smov (%p31_p1, %s29_s24), 0  ;;  %p259_p3 = pnand %p760_p0, %p258_p2 }
   0x6   : > { %p316_p4 = scmp.lt.s32.totalorder (!%p259_p3), %s852_s21, 1 }
   0x7   : > { %262 = sbr.rel (%p259_p3) target bundleno = 317 (0x13d), region = 40 }
   0xc   : > { %v862_v0 = vmov 0   ;;  %s1010_s21 = smov (!%p316_p4, %s852_s21), 1  ;;  %v440_v9 = vld [vmem:[%s1002_s4] sm:$0xff]  ;;  %v442_v10 = vld [vmem:[%s1002_s4 + $0x10] sm:$0xff]  ;;  %v441_v11 = vld [vmem:[%s1002_s4 + $0x8] sm:$0xff]  ;;  %vm508_vm0 = vcmask 261120  }
   0xd   : > { %837 = vset.pattern.permute.xlu2 %v862_v0  ;;  %836 = vset.pattern.permute.xlu1 %v862_v0  ;;  %s919_s25 = sshll.u32 %s1010_s21, 5  ;;  %v443_v12 = vld [vmem:[%s1002_s4 + $0x18] sm:$0xff]  ;;  %v445_v13 = vld [vmem:[%s1002_s4 + $0x28] sm:$0xff]  ;;  %v444_v14 = vld [vmem:[%s1002_s4 + $0x20] sm:$0xff]  ;;  %s797_s29 = sshll.u32 %s1010_s21, 6 }
   0xe   : > { %835 = vset.pattern.permute.xlu0 %v862_v0  ;;  %s334_s28 = scalar_lea.vmem %s1000_s2, %s919_s25  ;;  %s329_s7 = scalar_lea.vmem %s999_s1, %s919_s25  ;;  %v446_v15 = vld [vmem:[%s1002_s4 + $0x30] sm:$0xff]  ;;  %v447_v16 = vld [vmem:[%s1002_s4 + $0x38] sm:$0xff]  ;;  %v802_v53 = vld [vmem:[%s1001_s3] sm:$0xff] }
   0xf   : > { %v398_v1 = vld [vmem:[%s334_s28 + $0x10] sm:$0xff]  ;;  %v364_v3 = vld [vmem:[%s329_s7] sm:$0xff]  ;;  %v399_v4 = vld [vmem:[%s334_s28 + $0x18] sm:$0xff]  ;;  %s323_s8 = scalar_lea.vmem %s998_s0, %s797_s29  ;;  %s973_s18 = scalar_lea.vmem %s1003_s5, %s919_s25 }
  0x10   : > { %412 = vperm.xlu1 %836, %v398_v1   ;;  %v366_v2 = vld [vmem:[%s329_s7 + $0x10] sm:$0xff]  ;;  %370 = vperm.xlu2 %837, %v364_v3   ;;  %v367_v5 = vld [vmem:[%s329_s7 + $0x18] sm:$0xff]  ;;  %v365_v6 = vld [vmem:[%s329_s7 + $0x8] sm:$0xff]  ;;  %s980_s26 = scalar_lea.vmem %s1004_s6, %s919_s25 }
  0x11   : > { %380 = vperm.xlu0 %835, %v366_v2   ;;  %v397_v7 = vld [vmem:[%s334_s28 + $0x8] sm:$0xff]  ;;  %v396_v8 = vld [vmem:[%s334_s28] sm:$0xff]  ;;  %v362_v22 = vld [vmem:[%s323_s8 + $0x30] sm:$0xff] }
  0x12   : > { %v360_v20 = vld [vmem:[%s323_s8 + $0x20] sm:$0xff]  ;;  %v361_v21 = vld [vmem:[%s323_s8 + $0x28] sm:$0xff]  ;;  %v363_v23 = vld [vmem:[%s323_s8 + $0x38] sm:$0xff] }
  0x13   : > { %v358_v30 = vld [vmem:[%s323_s8 + $0x10] sm:$0xff]  ;;  %v359_v31 = vld [vmem:[%s323_s8 + $0x18] sm:$0xff]  ;;  %v356_v36 = vld [vmem:[%s323_s8] sm:$0xff] }
  0x14   : > { %v357_v37 = vld [vmem:[%s323_s8 + $0x8] sm:$0xff]  ;;  %v804_v54 = vld [vmem:[%s1001_s3 + $0x10] sm:$0xff]  ;;  %v805_v56 = vld [vmem:[%s1001_s3 + $0x18] sm:$0xff] }
  0x15   : > { %v803_v55 = vld [vmem:[%s1001_s3 + $0x8] sm:$0xff] }
  0x18   : > { %417 = vperm.xlu1 %836, %v399_v4   ;;  %375 = vperm.xlu2 %837, %v365_v6  }
  0x19   : > { %385 = vperm.xlu0 %835, %v367_v5  }
  0x20   : > { %407 = vperm.xlu1 %836, %v397_v7   ;;  %450 = vperm.xlu2 %837, %v440_v9  }
  0x21   : > { %402 = vperm.xlu0 %835, %v396_v8  }
  0x28   : > { %460 = vperm.xlu1 %836, %v442_v10   ;;  %465 = vperm.xlu2 %837, %v443_v12  }
  0x29   : > { %455 = vperm.xlu0 %835, %v441_v11  }
  0x30   : > { %475 = vperm.xlu1 %836, %v445_v13   ;;  %480 = vperm.xlu2 %837, %v446_v15  }
  0x31   : > { %470 = vperm.xlu0 %835, %v444_v14  }
  0x39   : > { %485 = vperm.xlu0 %835, %v447_v16  }
  0x6a   : > { %v371_v19 = vpop.permute.xlu2 %370 }
  0x6b   : > { %v388_v43 = vmul.f32 %v371_v19, %v356_v36  ;;  %v389_v44 = vmul.f32 %v371_v19, %v357_v37 }
  0x72   : > { %v376_v38 = vpop.permute.xlu2 %375 }
  0x73   : > { %v390_v41 = vmul.f32 %v376_v38, %v358_v30  ;;  %v391_v42 = vmul.f32 %v376_v38, %v359_v31 }
  0x7a   : > { %v451_v58 = vpop.permute.xlu2 %450 }
  0x82   : > { %v413_v17 = vpop.permute.xlu1 %412  ;;  %v466_v11 = vpop.permute.xlu2 %465 }
  0x83   : > { %v381_v18 = vpop.permute.xlu0 %380 }
  0x84   : > { %v392_v24 = vmul.f32 %v381_v18, %v360_v20  ;;  %v393_v25 = vmul.f32 %v381_v18, %v361_v21 }
  0x86   : > { %v424_v32 = vadd.f32 %v413_v17, %v392_v24  ;;  %v425_v34 = vadd.f32 %v413_v17, %v393_v25 }
  0x8a   : > { %v418_v26 = vpop.permute.xlu1 %417  ;;  %v481_v24 = vpop.permute.xlu2 %480 }
  0x8b   : > { %v386_v27 = vpop.permute.xlu0 %385 }
  0x8c   : > { %v394_v28 = vmul.f32 %v386_v27, %v362_v22  ;;  %v395_v29 = vmul.f32 %v386_v27, %v363_v23 }
  0x8e   : > { %v426_v33 = vadd.f32 %v418_v26, %v394_v28  ;;  %v427_v35 = vadd.f32 %v418_v26, %v395_v29 }
  0x90   : > { %v430_v39 = vpack.c.bf16 %v426_v33, %v424_v32  ;;  %v431_v40 = vpack.c.bf16 %v427_v35, %v425_v34 }
  0x92   : > { %527 = vmatpush.bf16.msra.mxu0 %v430_v39  ;;  %806 = vmatpush.bf16.msra.mxu2 %v430_v39  ;;  %v408_v45 = vpop.permute.xlu1 %407 }
  0x93   : > { %556 = vmatpush.bf16.msra.mxu1 %v431_v40  ;;  %808 = vmatpush.bf16.msra.mxu3 %v431_v40  ;;  %v422_v46 = vadd.f32 %v408_v45, %v390_v41  ;;  %v423_v47 = vadd.f32 %v408_v45, %v391_v42  ;;  %v403_v48 = vpop.permute.xlu0 %402 }
  0x94   : > { %v420_v49 = vadd.f32 %v403_v48, %v388_v43  ;;  %v421_v50 = vadd.f32 %v403_v48, %v389_v44 }
  0x96   : > { %v428_v51 = vpack.c.bf16 %v422_v46, %v420_v49  ;;  %v429_v52 = vpack.c.bf16 %v423_v47, %v421_v50 }
  0x98   : > { %528 = vmatpush.bf16.msra.mxu0 %v428_v51  ;;  %807 = vmatpush.bf16.msra.mxu2 %v428_v51 }
  0x99   : > { %557 = vmatpush.bf16.msra.mxu1 %v429_v52  ;;  %809 = vmatpush.bf16.msra.mxu3 %v429_v52 }
  0x9a   : > { %v461_v63 = vpop.permute.xlu1 %460 }
  0x9b   : > { %787 = vmatmul.msk.bf16.vlgmr.msra.gmra.mxu0 %vm508_vm0, %v802_v53  ;;  %789 = vmatmul.msk.bf16.vlgmr.msra.gmra.mxu2 %vm508_vm0, %v804_v54  ;;  %v456_v57 = vpop.permute.xlu0 %455 }
  0x9c   : > { %791 = vmatmul.msk.bf16.vlgmr.msra.gmra.mxu1 %vm508_vm0, %v802_v53  ;;  %793 = vmatmul.msk.bf16.vlgmr.msra.gmra.mxu3 %vm508_vm0, %v804_v54 }
  0xa2   : > { %v476_v13 = vpop.permute.xlu1 %475 }
  0xa3   : > { %v471_v1 = vpop.permute.xlu0 %470 }
  0xab   : > { %788 = vmatmul.msk.bf16.gmra.mxu0 %vm508_vm0, %v803_v55  ;;  %790 = vmatmul.msk.bf16.gmra.mxu2 %vm508_vm0, %v805_v56  ;;  %v486_v35 = vpop.permute.xlu0 %485 }
  0xac   : > { %792 = vmatmul.msk.bf16.gmra.mxu1 %vm508_vm0, %v803_v55  ;;  %794 = vmatmul.msk.bf16.gmra.mxu3 %vm508_vm0, %v805_v56 }
 0x118   : > { %v530_v59 = vpop.f32.mrf.mxu0 }
 0x119   : > { %v531_v60 = vadd.f32 %v530_v59, %v451_v58  ;;  %v559_v61 = vpop.f32.mrf.mxu1 }
 0x11a   : > { %v560_v62 = vadd.f32 %v559_v61, %v451_v58 }
 0x11c   : > { %v579_v0 = vpack.c.bf16 %v560_v62, %v531_v60 }
 0x11e   : > { %583 = vst [vmem:[%s973_s18] sm:$0xff] %v579_v0  ;;  %v540_v2 = vpop.f32.mrf.mxu2 }
 0x11f   : > { %v541_v3 = vadd.f32 %v540_v2, %v471_v1  ;;  %v569_v4 = vpop.f32.mrf.mxu3 }
 0x120   : > { %v570_v5 = vadd.f32 %v569_v4, %v471_v1  ;;  %v532_v6 = vpop.f32.mrf.mxu0 }
 0x121   : > { %v533_v7 = vadd.f32 %v532_v6, %v456_v57  ;;  %v561_v8 = vpop.f32.mrf.mxu1 }
 0x122   : > { %v587_v9 = vpack.c.bf16 %v570_v5, %v541_v3  ;;  %v562_v10 = vadd.f32 %v561_v8, %v456_v57 }
 0x124   : > { %591 = vst [vmem:[%s980_s26] sm:$0xff] %v587_v9  ;;  %v580_v12 = vpack.c.bf16 %v562_v10, %v533_v7 }
 0x126   : > { %584 = vst [vmem:[%s973_s18 + $0x8] sm:$0xff] %v580_v12  ;;  %v542_v14 = vpop.f32.mrf.mxu2 }
 0x127   : > { %v543_v15 = vadd.f32 %v542_v14, %v476_v13  ;;  %v571_v16 = vpop.f32.mrf.mxu3 }
 0x128   : > { %v572_v17 = vadd.f32 %v571_v16, %v476_v13  ;;  %v535_v18 = vpop.f32.mrf.mxu0 }
 0x129   : > { %v536_v19 = vadd.f32 %v535_v18, %v461_v63  ;;  %v564_v20 = vpop.f32.mrf.mxu1 }
 0x12a   : > { %v588_v21 = vpack.c.bf16 %v572_v17, %v543_v15  ;;  %v565_v22 = vadd.f32 %v564_v20, %v461_v63 }
 0x12c   : > { %592 = vst [vmem:[%s980_s26 + $0x8] sm:$0xff] %v588_v21  ;;  %v581_v23 = vpack.c.bf16 %v565_v22, %v536_v19 }
 0x12e   : > { %585 = vst [vmem:[%s973_s18 + $0x10] sm:$0xff] %v581_v23  ;;  %v545_v25 = vpop.f32.mrf.mxu2 }
 0x12f   : > { %v546_v26 = vadd.f32 %v545_v25, %v481_v24  ;;  %v574_v27 = vpop.f32.mrf.mxu3 }
 0x130   : > { %v575_v28 = vadd.f32 %v574_v27, %v481_v24  ;;  %v537_v29 = vpop.f32.mrf.mxu0 }
 0x131   : > { %v538_v30 = vadd.f32 %v537_v29, %v466_v11  ;;  %v566_v31 = vpop.f32.mrf.mxu1 }
 0x132   : > { %v589_v32 = vpack.c.bf16 %v575_v28, %v546_v26  ;;  %v567_v33 = vadd.f32 %v566_v31, %v466_v11 }
 0x134   : > { %593 = vst [vmem:[%s980_s26 + $0x10] sm:$0xff] %v589_v32  ;;  %v582_v34 = vpack.c.bf16 %v567_v33, %v538_v30 }
 0x136   : > { %586 = vst [vmem:[%s973_s18 + $0x18] sm:$0xff] %v582_v34  ;;  %v547_v36 = vpop.f32.mrf.mxu2 }
 0x137   : > { %v548_v37 = vadd.f32 %v547_v36, %v486_v35  ;;  %v576_v38 = vpop.f32.mrf.mxu3 }
 0x138   : > { %v577_v39 = vadd.f32 %v576_v38, %v486_v35 }
 0x13a   : > { %v590_v40 = vpack.c.bf16 %v577_v39, %v548_v37 }
 0x13c   : > { %594 = vst [vmem:[%s980_s26 + $0x18] sm:$0xff] %v590_v40 }
 0x13d PF: > { %s17_s23 = sadd.s32 1, %s860_s23   ;;  %s1005_s21 = smov %s856_s22 }
 0x13e   : > { %p14_p5 = scmp.ge.s32.totalorder %s17_s23, 4   ;;  %s1006_s22 = smov %s1008_s24 }
 0x140   :  { %16 = sbr.rel (!%p14_p5) target bundleno = 2 (0x2), region = 88 }

// kernel: nonlocal_block_pallas.5
= control target key start
LH: loop header
LB: loop body
LE: loop exit
PB: predicated region body
PF: predicated region fallthrough
CT: control target
= control target key end

     0   :  { %s2205_s30 = smov 0   ;;  %s2207_s10 = smov 0   ;;  %s3022_s0 = inlined_call_operand.vmem [shape: f32[2,32,256], index: 0, kind: input, shape index: {}]   ;;  %s3023_s1 = inlined_call_operand.vmem [shape: f32[2,32,1], index: 1, kind: input, shape index: {}]   ;;  %s3024_s2 = inlined_call_operand.vmem [shape: f32[2,32,1], index: 2, kind: input, shape index: {}]   ;;  %s3025_s3 = inlined_call_operand.vmem [shape: bf16[2,32,256], index: 3, kind: input, shape index: {}]   ;;  %s3026_s4 = inlined_call_operand.vmem [shape: bf16[2,32,256], index: 4, kind: input, shape index: {}]   ;;  %s3027_s5 = inlined_call_operand.vmem [shape: bf16[32,32], index: 5, kind: input, shape index: {}]   ;;  %s3028_s6 = inlined_call_operand.vmem [shape: f32[32,1], index: 6, kind: input, shape index: {}]   ;;  %s3029_s7 = inlined_call_operand.vmem [shape: bf16[32,32], index: 7, kind: input, shape index: {}]   ;;  %s3030_s8 = inlined_call_operand.vmem [shape: f32[32,1], index: 8, kind: input, shape index: {}]   ;;  %s3031_s9 = inlined_call_operand.vmem [shape: f32[2,32,256], index: 9, kind: output, shape index: {}]  }
   0x1   :  { %s2209_s11 = smov 0  }
   0x2 LB: > { %s38_s12 = sadd.s32 1, %s2146_s10  ;;  %p1821_p0 = scmp.ge.s32.totalorder %s2150_s11, 1  ;;  %s2150_s11 = sphi %s2209_s11, %s19_s11   ;;  %s2146_s10 = sphi %s2207_s10, %s3127_s10   ;;  %s2142_s30 = sphi %s2205_s30, %s3126_s30  }
   0x3   : > { %p40_p1 = scmp.ge.s32.totalorder %s38_s12, 2  ;;  %p369_p2 = scmp.lt.s32.totalorder %s2150_s11, 3 }
   0x5   : > { %s3129_s12 = smov (%p40_p1, %s38_s12), 0  ;;  %p370_p3 = pnand %p1821_p0, %p369_p2 }
   0x7   : > { %373 = sbr.rel (%p370_p3) target bundleno = 1114 (0x45a), region = 56 }
   0xc   : > { %p442_p4 = scmp.lt.s32.totalorder %s2142_s30, 1  ;;  %v2152_v0 = vmov 0   ;;  %v578_v9 = vld [vmem:[%s3028_s6 + $0x10] sm:$0xff]  ;;  %v576_v10 = vld [vmem:[%s3028_s6] sm:$0xff]  ;;  %v579_v11 = vld [vmem:[%s3028_s6 + $0x18] sm:$0xff]  ;;  %vm610_vm0 = vcmask 261120  }
   0xd   : > { %1995 = vset.pattern.permute.xlu2 %v2152_v0  ;;  %1994 = vset.pattern.permute.xlu1 %v2152_v0  ;;  %v577_v12 = vld [vmem:[%s3028_s6 + $0x8] sm:$0xff]  ;;  %v1627_v13 = vld [vmem:[%s3030_s8] sm:$0xff]  ;;  %v1629_v15 = vld [vmem:[%s3030_s8 + $0x10] sm:$0xff]  ;;  %vm1066_vm2 = vcmask 1040384  }
   0xe   : > { %1993 = vset.pattern.permute.xlu0 %v2152_v0  ;;  %s3131_s30 = smov (!%p442_p4, %s2142_s30), 1  ;;  %v1628_v14 = vld [vmem:[%s3030_s8 + $0x8] sm:$0xff]  ;;  %v1630_v16 = vld [vmem:[%s3030_s8 + $0x18] sm:$0xff] }
   0xf   : > { %s2226_s13 = sshll.u32 %s3131_s30, 5  ;;  %s1940_s23 = sshll.u32 %s3131_s30, 6 }
  0x10   : > { %s460_s16 = scalar_lea.vmem %s3024_s2, %s2226_s13  ;;  %s455_s19 = scalar_lea.vmem %s3023_s1, %s2226_s13 }
  0x11   : > { %v538_v1 = vld [vmem:[%s460_s16 + $0x10] sm:$0xff]  ;;  %v504_v3 = vld [vmem:[%s455_s19] sm:$0xff]  ;;  %v539_v4 = vld [vmem:[%s460_s16 + $0x18] sm:$0xff]  ;;  %s469_s22 = scalar_lea.vmem %s3025_s3, %s2226_s13  ;;  %s2270_s26 = scalar_lea.vmem %s3022_s0, %s1940_s23 }
  0x12   : > { %552 = vperm.xlu1 %1994, %v538_v1   ;;  %v506_v2 = vld [vmem:[%s455_s19 + $0x10] sm:$0xff]  ;;  %510 = vperm.xlu2 %1995, %v504_v3   ;;  %v507_v5 = vld [vmem:[%s455_s19 + $0x18] sm:$0xff]  ;;  %v505_v6 = vld [vmem:[%s455_s19 + $0x8] sm:$0xff]  ;;  %s2844_s17 = scalar_lea.vmem %s3026_s4, %s2226_s13  ;;  %s2996_s24 = scalar_lea.vmem %s3031_s9, %s1940_s23 }
  0x13   : > { %520 = vperm.xlu0 %1993, %v506_v2   ;;  %v537_v7 = vld [vmem:[%s460_s16 + $0x8] sm:$0xff]  ;;  %v536_v8 = vld [vmem:[%s460_s16] sm:$0xff]  ;;  %v1950_v23 = vld [vmem:[%s469_s22 + $0x14] sm:$0xf] }
  0x14   : > { %v1948_v17 = vld [vmem:[%s469_s22 + $0x4] sm:$0xf]  ;;  %v1848_v18 = vld [vmem:[%s469_s22] sm:$0xf]  ;;  %v1850_v19 = vld [vmem:[%s469_s22 + $0x8] sm:$0xf0] }
  0x15   : > { %v1949_v20 = vld [vmem:[%s469_s22 + $0x4] sm:$0xf0]  ;;  %v1853_v22 = vor.u32 %v1948_v17, %v1850_v19  ;;  %v1856_v24 = vld [vmem:[%s469_s22 + $0x10] sm:$0xf]  ;;  %v1858_v25 = vld [vmem:[%s469_s22 + $0x18] sm:$0xf0] }
  0x16   : > { %v1849_v21 = vor.u32 %v1949_v20, %v1848_v18  ;;  %v1951_v26 = vld [vmem:[%s469_s22 + $0x14] sm:$0xf0]  ;;  %v1861_v28 = vor.u32 %v1950_v23, %v1858_v25  ;;  %v500_v32 = vld [vmem:[%s2270_s26 + $0x20] sm:$0xff]  ;;  %v501_v33 = vld [vmem:[%s2270_s26 + $0x28] sm:$0xff] }
  0x17   : > { %v1857_v27 = vor.u32 %v1951_v26, %v1856_v24  ;;  %v502_v35 = vld [vmem:[%s2270_s26 + $0x30] sm:$0xff]  ;;  %v503_v36 = vld [vmem:[%s2270_s26 + $0x38] sm:$0xff]  ;;  %v496_v44 = vld [vmem:[%s2270_s26] sm:$0xff] }
  0x18   : > { %v498_v42 = vld [vmem:[%s2270_s26 + $0x10] sm:$0xff]  ;;  %v499_v43 = vld [vmem:[%s2270_s26 + $0x18] sm:$0xff]  ;;  %v497_v49 = vld [vmem:[%s2270_s26 + $0x8] sm:$0xff] }
  0x19   : > { %v1946_v1 = vld [vmem:[%s3027_s5] sm:$0xff]  ;;  %v1947_v2 = vld [vmem:[%s3027_s5 + $0x8] sm:$0xff] }
  0x1a   : > { %557 = vperm.xlu1 %1994, %v539_v4   ;;  %515 = vperm.xlu2 %1995, %v505_v6  }
  0x1b   : > { %525 = vperm.xlu0 %1993, %v507_v5  }
  0x22   : > { %547 = vperm.xlu1 %1994, %v537_v7   ;;  %592 = vperm.xlu2 %1995, %v578_v9  }
  0x23   : > { %542 = vperm.xlu0 %1993, %v536_v8  }
  0x2a   : > { %582 = vperm.xlu1 %1994, %v576_v10   ;;  %587 = vperm.xlu2 %1995, %v577_v12  }
  0x2b   : > { %597 = vperm.xlu0 %1993, %v579_v11  }
  0x32   : > { %1633 = vperm.xlu1 %1994, %v1627_v13   ;;  %1638 = vperm.xlu2 %1995, %v1628_v14  }
  0x3a   : > { %1643 = vperm.xlu1 %1994, %v1629_v15   ;;  %1648 = vperm.xlu2 %1995, %v1630_v16  }
  0x4d   : > { %717 = vxpose.binary.xlu0.c.b16.start [1/4] (short) %v1853_v22, %v1849_v21, 128 }
  0x5d   : > { %718 = vxpose.binary.xlu0.c.b16.end [2/4] (short) %v1861_v28, %v1857_v27, 128 }
  0x6c   : > { %v511_v31 = vpop.permute.xlu2 %510 }
  0x6d   : > { %v528_v55 = vmul.f32 %v511_v31, %v496_v44  ;;  %v529_v57 = vmul.f32 %v511_v31, %v497_v49 }
  0x74   : > { %v516_v50 = vpop.permute.xlu2 %515 }
  0x75   : > { %v530_v51 = vmul.f32 %v516_v50, %v498_v42  ;;  %v531_v52 = vmul.f32 %v516_v50, %v499_v43 }
  0x7c   : > { %v593_v8 = vpop.permute.xlu2 %592 }
  0x84   : > { %v553_v29 = vpop.permute.xlu1 %552  ;;  %v588_v18 = vpop.permute.xlu2 %587 }
  0x85   : > { %v521_v30 = vpop.permute.xlu0 %520 }
  0x86   : > { %v532_v37 = vmul.f32 %v521_v30, %v500_v32  ;;  %v533_v38 = vmul.f32 %v521_v30, %v501_v33 }
  0x88   : > { %v564_v45 = vadd.f32 %v553_v29, %v532_v37  ;;  %v565_v47 = vadd.f32 %v553_v29, %v533_v38 }
  0x8c   : > { %v558_v34 = vpop.permute.xlu1 %557 }
  0x8d   : > { %v526_v39 = vpop.permute.xlu0 %525 }
  0x8e   : > { %v534_v40 = vmul.f32 %v526_v39, %v502_v35  ;;  %v535_v41 = vmul.f32 %v526_v39, %v503_v36 }
  0x90   : > { %v566_v46 = vadd.f32 %v558_v34, %v534_v40  ;;  %v567_v48 = vadd.f32 %v558_v34, %v535_v41 }
  0x92   : > { %v574_v53 = vpack.c.bf16 %v566_v46, %v564_v45  ;;  %v575_v54 = vpack.c.bf16 %v567_v48, %v565_v47 }
  0x94   : > { %v548_v56 = vpop.permute.xlu1 %547  ;;  %623 = vmatpush.bf16.msra.mxu0 %v574_v53  ;;  %642 = vmatpush.bf16.msra.mxu1 %v575_v54 }
  0x95   : > { %v562_v58 = vadd.f32 %v548_v56, %v530_v51  ;;  %v563_v59 = vadd.f32 %v548_v56, %v531_v52  ;;  %v543_v60 = vpop.permute.xlu0 %542 }
  0x96   : > { %v560_v61 = vadd.f32 %v543_v60, %v528_v55  ;;  %v561_v62 = vadd.f32 %v543_v60, %v529_v57 }
  0x98   : > { %v572_v63 = vpack.c.bf16 %v562_v58, %v560_v61  ;;  %v573_v0 = vpack.c.bf16 %v563_v59, %v561_v62 }
  0x9a   : > { %624 = vmatpush.bf16.msra.mxu0 %v572_v63  ;;  %643 = vmatpush.bf16.msra.mxu1 %v573_v0 }
  0x9c   : > { %v583_v9 = vpop.permute.xlu1 %582 }
  0x9d   : > { %1842 = vmatmul.msk.bf16.vlgmr.msra.gmra.mxu0 %vm610_vm0, %v1946_v1  ;;  %1844 = vmatmul.msk.bf16.vlgmr.msra.gmra.mxu1 %vm610_vm0, %v1946_v1  ;;  %v598_v3 = vpop.permute.xlu0 %597 }
  0xad   : > { %1843 = vmatmul.msk.bf16.gmra.mxu0 %vm610_vm0, %v1947_v2  ;;  %1845 = vmatmul.msk.bf16.gmra.mxu1 %vm610_vm0, %v1947_v2 }
  0xf9   : > { %v2290_v4 = vpop.trf.xlu0 }
 0x101   : > { %v2292_v5 = vpop.trf.xlu0 }
 0x109   : > { %v2294_v6 = vpop.trf.xlu0 }
 0x111   : > { %v2296_v7 = vpop.trf.xlu0 }
 0x119   : > { %v2298_v10 = vpop.trf.xlu0 }
 0x11a   : > { %v626_v11 = vpop.f32.mrf.mxu0  ;;  %v645_v12 = vpop.f32.mrf.mxu1 }
 0x11b   : > { %v627_v13 = vadd.f32 %v626_v11, %v583_v9  ;;  %v646_v14 = vadd.f32 %v645_v12, %v583_v9 }
 0x11d   : > { %v655_v15 = vmul.f32 0.17677669, %v627_v13  ;;  %v656_v16 = vmul.f32 0.17677669, %v646_v14 }
 0x11f   : > { %v663_v17 = vpack.c.bf16 %v656_v16, %v655_v15 }
 0x121   : > { %667 = vst [vmem:[#allocation2] sm:$0xff] %v663_v17  ;;  %v2300_v19 = vpop.trf.xlu0 }
 0x122   : > { %v628_v20 = vpop.f32.mrf.mxu0  ;;  %v647_v21 = vpop.f32.mrf.mxu1 }
 0x123   : > { %v629_v22 = vadd.f32 %v628_v20, %v588_v18  ;;  %v648_v23 = vadd.f32 %v647_v21, %v588_v18 }
 0x125   : > { %v657_v24 = vmul.f32 0.17677669, %v629_v22  ;;  %v658_v25 = vmul.f32 0.17677669, %v648_v23 }
 0x127   : > { %v664_v26 = vpack.c.bf16 %v658_v25, %v657_v24 }
 0x128   : > { %v1864_v52 = vld [vmem:[#allocation2] sm:$0xf]  ;;  %v1956_v54 = vld [vmem:[#allocation2 + $0x4] sm:$0xf] }
 0x129   : > { %668 = vst [vmem:[#allocation2 + $0x8] sm:$0xff] %v664_v26  ;;  %v731_v27 = vpop.trf.xlu0 }
 0x12a   : > { %v631_v28 = vpop.f32.mrf.mxu0  ;;  %v650_v29 = vpop.f32.mrf.mxu1 }
 0x12b   : > { %v632_v30 = vadd.f32 %v631_v28, %v593_v8  ;;  %v651_v31 = vadd.f32 %v650_v29, %v593_v8 }
 0x12d   : > { %v659_v32 = vmul.f32 0.17677669, %v632_v30  ;;  %v660_v33 = vmul.f32 0.17677669, %v651_v31 }
 0x12f   : > { %v665_v34 = vpack.c.bf16 %v660_v33, %v659_v32 }
 0x130   : > { %v1957_v50 = vld [vmem:[#allocation2 + $0x4] sm:$0xf0]  ;;  %v1866_v51 = vld [vmem:[#allocation2 + $0x8] sm:$0xf0] }
 0x131   : > { %669 = vst [vmem:[#allocation2 + $0x10] sm:$0xff] %v665_v34  ;;  %v732_v35 = vpop.trf.xlu0  ;;  %v1865_v53 = vor.u32 %v1957_v50, %v1864_v52  ;;  %v1869_v56 = vor.u32 %v1956_v54, %v1866_v51 }
 0x132   : > { %v633_v36 = vpop.f32.mrf.mxu0  ;;  %v652_v37 = vpop.f32.mrf.mxu1 }
 0x133   : > { %v634_v38 = vadd.f32 %v633_v36, %v598_v3  ;;  %v653_v39 = vadd.f32 %v652_v37, %v598_v3 }
 0x135   : > { %v661_v40 = vmul.f32 0.17677669, %v634_v38  ;;  %v662_v41 = vmul.f32 0.17677669, %v653_v39 }
 0x137   : > { %v666_v42 = vpack.c.bf16 %v662_v41, %v661_v40 }
 0x138   : > { %v1872_v44 = vld [vmem:[#allocation2 + $0x10] sm:$0xf]  ;;  %v1958_v46 = vld [vmem:[#allocation2 + $0x14] sm:$0xf] }
 0x139   : > { %670 = vst [vmem:[#allocation2 + $0x18] sm:$0xff] %v666_v42  ;;  %v733_v43 = vpop.trf.xlu0 }
 0x140   : > { %v1959_v45 = vld [vmem:[#allocation2 + $0x14] sm:$0xf0]  ;;  %v1874_v47 = vld [vmem:[#allocation2 + $0x18] sm:$0xf0] }
 0x141   : > { %v1873_v48 = vor.u32 %v1959_v45, %v1872_v44  ;;  %v1877_v49 = vor.u32 %v1958_v46, %v1874_v47  ;;  %v734_v55 = vpop.trf.xlu0 }
 0x143   : > { %816 = vmatpush.bf16.msrb.mxu0 %v1873_v48  ;;  %1962 = vmatpush.bf16.msra.mxu2 %v1873_v48 }
 0x144   : > { %905 = vmatpush.bf16.msrb.mxu1 %v1877_v49  ;;  %1964 = vmatpush.bf16.msra.mxu3 %v1877_v49 }
 0x147   : > { %817 = vmatpush.bf16.msrb.mxu0 %v1865_v53  ;;  %1963 = vmatpush.bf16.msra.mxu2 %v1865_v53 }
 0x148   : > { %906 = vmatpush.bf16.msrb.mxu1 %v1869_v56  ;;  %1965 = vmatpush.bf16.msra.mxu3 %v1869_v56 }
 0x149   : > { %v735_v57 = vpop.trf.xlu0 }
 0x14a   : > { %1878 = vmatmul.msk.bf16.vlgmr.msrb.gmra.mxu0 %vm610_vm0, %v2290_v4  ;;  %1882 = vmatmul.msk.bf16.vlgmr.msra.gmra.mxu2 %vm610_vm0, %v733_v43 }
 0x14b   : > { %1894 = vmatmul.msk.bf16.vlgmr.msrb.gmra.mxu1 %vm610_vm0, %v2290_v4  ;;  %1898 = vmatmul.msk.bf16.vlgmr.msra.gmra.mxu3 %vm610_vm0, %v733_v43 }
 0x151   : > { %v736_v58 = vpop.trf.xlu0 }
 0x159   : > { %v737_v59 = vpop.trf.xlu0 }
 0x15a   : > { %1879 = vmatmul.msk.bf16.gmra.mxu0 %vm610_vm0, %v2294_v6  ;;  %1883 = vmatmul.msk.bf16.gmra.mxu2 %vm610_vm0, %v735_v57 }
 0x15b   : > { %1895 = vmatmul.msk.bf16.gmra.mxu1 %vm610_vm0, %v2294_v6  ;;  %1899 = vmatmul.msk.bf16.gmra.mxu3 %vm610_vm0, %v735_v57 }
 0x161   : > { %v738_v60 = vpop.trf.xlu0 }
 0x169   : > { %v739_v61 = vpop.trf.xlu0 }
 0x16a   : > { %1880 = vmatmul.msk.bf16.gmra.mxu0 %vm610_vm0, %v2298_v10  ;;  %1884 = vmatmul.msk.bf16.gmra.mxu2 %vm610_vm0, %v737_v59 }
 0x16b   : > { %1896 = vmatmul.msk.bf16.gmra.mxu1 %vm610_vm0, %v2298_v10  ;;  %1900 = vmatmul.msk.bf16.gmra.mxu3 %vm610_vm0, %v737_v59 }
 0x171   : > { %v740_v10 = vpop.trf.xlu0 }
 0x17a   : > { %1881 = vmatmul.msk.bf16.gmra.mxu0 %vm610_vm0, %v731_v27  ;;  %1885 = vmatmul.msk.bf16.gmra.mxu2 %vm610_vm0, %v739_v61 }
 0x17b   : > { %1897 = vmatmul.msk.bf16.gmra.mxu1 %vm610_vm0, %v731_v27  ;;  %1901 = vmatmul.msk.bf16.gmra.mxu3 %vm610_vm0, %v739_v61 }
 0x18a   : > { %1886 = vmatmul.msk.bf16.gmra.mxu2 %vm610_vm0, %v2292_v5 }
 0x18b   : > { %1902 = vmatmul.msk.bf16.gmra.mxu3 %vm610_vm0, %v2292_v5 }
 0x19a   : > { %1887 = vmatmul.msk.bf16.gmra.mxu2 %vm610_vm0, %v2296_v7 }
 0x19b   : > { %1903 = vmatmul.msk.bf16.gmra.mxu3 %vm610_vm0, %v2296_v7 }
 0x1aa   : > { %1888 = vmatmul.msk.bf16.gmra.mxu2 %vm610_vm0, %v2300_v19 }
 0x1ab   : > { %1904 = vmatmul.msk.bf16.gmra.mxu3 %vm610_vm0, %v2300_v19 }
 0x1ba   : > { %1889 = vmatmul.msk.bf16.gmra.mxu2 %vm610_vm0, %v732_v35 }
 0x1bb   : > { %1905 = vmatmul.msk.bf16.gmra.mxu3 %vm610_vm0, %v732_v35 }
 0x1c7   : > { %v2386_v19 = vpop.f32.mrf.mxu0 }
 0x1c8   : > { %v2390_v21 = vpop.f32.mrf.mxu1 }
 0x1ca   : > { %1890 = vmatmul.msk.bf16.gmra.mxu2 %vm610_vm0, %v734_v55 }
 0x1cb   : > { %1906 = vmatmul.msk.bf16.gmra.mxu3 %vm610_vm0, %v734_v55 }
 0x1cd   : > { %v2340_v62 = vpop.f32.mrf.mxu2 }
 0x1ce   : > { %v2342_v63 = vpop.f32.mrf.mxu3 }
 0x1cf   : > { %v2398_v25 = vpop.f32.mrf.mxu0 }
 0x1d0   : > { %v2400_v26 = vpop.f32.mrf.mxu1 }
 0x1d5   : > { %v2344_v0 = vpop.f32.mrf.mxu2 }
 0x1d6   : > { %v2346_v1 = vpop.f32.mrf.mxu3 }
 0x1d7   : > { %v2406_v29 = vpop.f32.mrf.mxu0 }
 0x1d8   : > { %v2408_v30 = vpop.f32.mrf.mxu1  ;;  %v989_v51 = vmax.f32 %v2386_v19, %v2406_v29 }
 0x1d9   : > { %3065 = vst [vmem:[#allocation11_spill] sm:$0xff] %v2408_v30  ;;  %v1026_v53 = vmax.f32 %v2390_v21, %v2408_v30 }
 0x1da   : > { %1891 = vmatmul.msk.bf16.gmra.mxu2 %vm610_vm0, %v736_v58 }
 0x1db   : > { %1907 = vmatmul.msk.bf16.gmra.mxu3 %vm610_vm0, %v736_v58 }
 0x1dd   : > { %v2350_v2 = vpop.f32.mrf.mxu2 }
 0x1de   : > { %v2352_v3 = vpop.f32.mrf.mxu3 }
 0x1df   : > { %v2414_v33 = vpop.f32.mrf.mxu0 }
 0x1e0   : > { %3066 = vst [vmem:[#allocation12_spill] sm:$0xff] %v2414_v33  ;;  %v2416_v34 = vpop.f32.mrf.mxu1  ;;  %v990_v52 = vmax.f32 %v2398_v25, %v2414_v33 }
 0x1e1   : > { %3067 = vst [vmem:[#allocation13_spill] sm:$0xff] %v2416_v34  ;;  %v1027_v54 = vmax.f32 %v2400_v26, %v2416_v34 }
 0x1e5   : > { %v2354_v4 = vpop.f32.mrf.mxu2 }
 0x1e6   : > { %3060 = vst [vmem:[#allocation6_spill] sm:$0xff] %v2354_v4  ;;  %v2356_v5 = vpop.f32.mrf.mxu3 }
 0x1e7   : > { %3061 = vst [vmem:[#allocation7_spill] sm:$0xff] %v2356_v5  ;;  %v2422_v37 = vpop.f32.mrf.mxu0 }
 0x1e8   : > { %v2426_v39 = vpop.f32.mrf.mxu1  ;;  %v991_v56 = vmax.f32 %v989_v51, %v2422_v37 }
 0x1e9   : > { %v1028_v59 = vmax.f32 %v1026_v53, %v2426_v39 }
 0x1ea   : > { %1892 = vmatmul.msk.bf16.gmra.mxu2 %vm610_vm0, %v738_v60 }
 0x1eb   : > { %1908 = vmatmul.msk.bf16.gmra.mxu3 %vm610_vm0, %v738_v60 }
 0x1ed   : > { %v2360_v6 = vpop.f32.mrf.mxu2 }
 0x1ee   : > { %v2362_v7 = vpop.f32.mrf.mxu3 }
 0x1ef   : > { %3062 = vst [vmem:[#allocation8_spill] sm:$0xff] %v2362_v7  ;;  %v2434_v43 = vpop.f32.mrf.mxu0 }
 0x1f0   : > { %3072 = vst [vmem:[#allocation18_spill] sm:$0xff] %v2434_v43  ;;  %v2436_v44 = vpop.f32.mrf.mxu1  ;;  %v992_v57 = vmax.f32 %v990_v52, %v2434_v43 }
 0x1f1   : > { %3073 = vst [vmem:[#allocation19_spill] sm:$0xff] %v2436_v44  ;;  %v1029_v60 = vmax.f32 %v1027_v54, %v2436_v44 }
 0x1f5   : > { %v2364_v8 = vpop.f32.mrf.mxu2 }
 0x1f6   : > { %v2366_v9 = vpop.f32.mrf.mxu3 }
 0x1f7   : > { %3063 = vst [vmem:[#allocation9_spill] sm:$0xff] %v2366_v9  ;;  %v2442_v47 = vpop.f32.mrf.mxu0 }
 0x1f8   : > { %v2444_v48 = vpop.f32.mrf.mxu1 }
 0x1f9   : > { %v1030_v34 = vmax.f32 %v1028_v59, %v2444_v48 }
 0x1fa   : > { %1893 = vmatmul.msk.bf16.gmra.mxu2 %vm610_vm0, %v740_v10 }
 0x1fb   : > { %1909 = vmatmul.msk.bf16.gmra.mxu3 %vm610_vm0, %v740_v10  ;;  %v993_v10 = vmax.f32 %v991_v56, %v2442_v47  ;;  %v1032_v53 = vmax.f32 %v1030_v34, %v2342_v63 }
 0x1fd   : > { %v2370_v11 = vpop.f32.mrf.mxu2  ;;  %v995_v52 = vmax.f32 %v993_v10, %v2340_v62  ;;  %v1034_v59 = vmax.f32 %v1032_v53, %v2352_v3  ;;  %v3082_v10 = vmov 0 }
 0x1fe   : > { %v2372_v12 = vpop.f32.mrf.mxu3 }
 0x1ff   : > { %v2458_v55 = vpop.f32.mrf.mxu0  ;;  %v997_v56 = vmax.f32 %v995_v52, %v2350_v2 }
 0x200   : > { %3078 = vst [vmem:[#allocation24_spill] sm:$0xff] %v2458_v55  ;;  %v2462_v58 = vpop.f32.mrf.mxu1  ;;  %v994_v33 = vmax.f32 %v992_v57, %v2458_v55 }
 0x201   : > { %3079 = vst [vmem:[#allocation25_spill] sm:$0xff] %v2462_v58  ;;  %v1031_v51 = vmax.f32 %v1029_v60, %v2462_v58  ;;  %v671_v58 = vlaneseq }
 0x202   : > { %v996_v43 = vmax.f32 %v994_v33, %v2344_v0  ;;  %v999_v33 = vmax.f32 %v997_v56, %v2360_v6 }
 0x203   : > { %v1033_v54 = vmax.f32 %v1031_v51, %v2346_v1  ;;  %vm2486_vm1 = vcmp.lt.s32.totalorder %v671_v58, 256  ;;  %v2153_v51 = vmov -inf  }
 0x204   : > { %v998_v57 = vmax.f32 %v996_v43, %v2354_v4  ;;  %v3083_v10 = vsel %vm2486_vm1, 4294967295, %v3082_v10  ;;  %675 = vst.msk [vmem:[#allocation3] sm:$0x3] %vm2486_vm1, %v2153_v51  ;;  %v1036_v43 = vmax.f32 %v1034_v59, %v2362_v7  ;;  %v1001_v58 = vmax.f32 %v999_v33, %v2370_v11 }
 0x205   : > { %v2374_v13 = vpop.f32.mrf.mxu2  ;;  %v1035_v60 = vmax.f32 %v1033_v54, %v2356_v5  ;;  %3084 = vst [vmem:[#allocation28_spill] sm:$0xff] %v3083_v10  ;;  %v2154_v54 = vmov 0.0  }
 0x206   : > { %v2376_v14 = vpop.f32.mrf.mxu3  ;;  %v1000_v34 = vmax.f32 %v998_v57, %v2364_v8  ;;  %676 = vst.msk [vmem:[#allocation4] sm:$0x3] %vm2486_vm1, %v2154_v54  ;;  %v1038_v57 = vmax.f32 %v1036_v43, %v2372_v12 }
 0x207   : > { %v1037_v52 = vmax.f32 %v1035_v60, %v2366_v9 }
 0x208   : > { %v1002_v56 = vmax.f32 %v1000_v34, %v2374_v13 }
 0x209   : > { %v1039_v51 = vmax.f32 %v1037_v52, %v2376_v14 }
 0x20d   : > { %v2378_v15 = vpop.f32.mrf.mxu2 }
 0x20e   : > { %v2380_v16 = vpop.f32.mrf.mxu3  ;;  %v1003_v59 = vmax.f32 %v1001_v58, %v2378_v15 }
 0x20f   : > { %v1040_v9 = vmax.f32 %v1038_v57, %v2380_v16 }
 0x215   : > { %v2382_v17 = vpop.f32.mrf.mxu2 }
 0x216   : > { %3064 = vst [vmem:[#allocation10_spill] sm:$0xff] %v2382_v17  ;;  %v2384_v18 = vpop.f32.mrf.mxu3  ;;  %v1004_v60 = vmax.f32 %v1002_v56, %v2382_v17 }
 0x217   : > { %v1041_v7 = vmax.f32 %v1039_v51, %v2384_v18 }
 0x21d   : > { %v2388_v20 = vpop.f32.mrf.mxu2 }
 0x21e   : > { %v2392_v22 = vpop.f32.mrf.mxu3  ;;  %v1005_v54 = vmax.f32 %v1003_v59, %v2388_v20 }
 0x21f   : > { %v1042_v34 = vmax.f32 %v1040_v9, %v2392_v22 }
 0x225   : > { %v2394_v23 = vpop.f32.mrf.mxu2 }
 0x226   : > { %v2396_v24 = vpop.f32.mrf.mxu3  ;;  %v1006_v33 = vmax.f32 %v1004_v60, %v2394_v23 }
 0x227   : > { %v1043_v4 = vmax.f32 %v1041_v7, %v2396_v24 }
 0x22d   : > { %v2402_v27 = vpop.f32.mrf.mxu2 }
 0x22e   : > { %v2404_v28 = vpop.f32.mrf.mxu3  ;;  %v1007_v43 = vmax.f32 %v1005_v54, %v2402_v27 }
 0x22f   : > { %v1044_v58 = vmax.f32 %v1042_v34, %v2404_v28 }
 0x235   : > { %v2410_v31 = vpop.f32.mrf.mxu2 }
 0x236   : > { %v2412_v32 = vpop.f32.mrf.mxu3  ;;  %v1008_v52 = vmax.f32 %v1006_v33, %v2410_v31 }
 0x237   : > { %v1045_v56 = vmax.f32 %v1043_v4, %v2412_v32 }
 0x23d   : > { %v2418_v35 = vpop.f32.mrf.mxu2 }
 0x23e   : > { %v2420_v36 = vpop.f32.mrf.mxu3  ;;  %v1009_v57 = vmax.f32 %v1007_v43, %v2418_v35 }
 0x23f   : > { %v1046_v9 = vmax.f32 %v1044_v58, %v2420_v36 }
 0x245   : > { %v2424_v38 = vpop.f32.mrf.mxu2 }
 0x246   : > { %3068 = vst [vmem:[#allocation14_spill] sm:$0xff] %v2424_v38  ;;  %v2428_v40 = vpop.f32.mrf.mxu3  ;;  %v1010_v51 = vmax.f32 %v1008_v52, %v2424_v38 }
 0x247   : > { %3069 = vst [vmem:[#allocation15_spill] sm:$0xff] %v2428_v40  ;;  %v1047_v7 = vmax.f32 %v1045_v56, %v2428_v40  ;;  %v2546_v40 = vld [vmem:[#allocation3] sm:$0x3] }
 0x248   : > { %3085 = vst [vmem:[#allocation29_spill] sm:$0xff] %v2546_v40 }
 0x24d   : > { %v2430_v41 = vpop.f32.mrf.mxu2 }
 0x24e   : > { %3070 = vst [vmem:[#allocation16_spill] sm:$0xff] %v2430_v41  ;;  %v2432_v42 = vpop.f32.mrf.mxu3  ;;  %v1011_v60 = vmax.f32 %v1009_v57, %v2430_v41 }
 0x24f   : > { %3071 = vst [vmem:[#allocation17_spill] sm:$0xff] %v2432_v42  ;;  %v1048_v33 = vmax.f32 %v1046_v9, %v2432_v42 }
 0x255   : > { %v2438_v45 = vpop.f32.mrf.mxu2 }
 0x256   : > { %3074 = vst [vmem:[#allocation20_spill] sm:$0xff] %v2438_v45  ;;  %v2440_v46 = vpop.f32.mrf.mxu3  ;;  %v1012_v54 = vmax.f32 %v1010_v51, %v2438_v45 }
 0x257   : > { %3075 = vst [vmem:[#allocation21_spill] sm:$0xff] %v2440_v46  ;;  %v1049_v4 = vmax.f32 %v1047_v7, %v2440_v46 }
 0x25d   : > { %v2446_v49 = vpop.f32.mrf.mxu2 }
 0x25e   : > { %3076 = vst [vmem:[#allocation22_spill] sm:$0xff] %v2446_v49  ;;  %v2448_v50 = vpop.f32.mrf.mxu3  ;;  %v1013_v34 = vmax.f32 %v1011_v60, %v2446_v49 }
 0x25f   : > { %3077 = vst [vmem:[#allocation23_spill] sm:$0xff] %v2448_v50  ;;  %v1050_v52 = vmax.f32 %v1048_v33, %v2448_v50 }
 0x265   : > { %v2466_v61 = vpop.f32.mrf.mxu2 }
 0x266   : > { %3080 = vst [vmem:[#allocation26_spill] sm:$0xff] %v2466_v61  ;;  %v2470_v30 = vpop.f32.mrf.mxu3  ;;  %v1014_v43 = vmax.f32 %v1012_v54, %v2466_v61 }
 0x267   : > { %3081 = vst [vmem:[#allocation27_spill] sm:$0xff] %v2470_v30  ;;  %v1051_v38 = vmax.f32 %v1049_v4, %v2470_v30 }
 0x26d   : > { %v2478_v44 = vpop.f32.mrf.mxu2 }
 0x26e   : > { %v2482_v55 = vpop.f32.mrf.mxu3  ;;  %v1015_v58 = vmax.f32 %v1013_v34, %v2478_v44 }
 0x26f   : > { %v1052_v57 = vmax.f32 %v1050_v52, %v2482_v55 }
 0x275   : > { %v2496_v53 = vpop.f32.mrf.mxu2 }
 0x276   : > { %v2502_v5 = vpop.f32.mrf.mxu3  ;;  %v1016_v56 = vmax.f32 %v1014_v43, %v2496_v53 }
 0x277   : > { %v1053_v51 = vmax.f32 %v1051_v38, %v2502_v5 }
 0x27d   : > { %v2518_v17 = vpop.f32.mrf.mxu2 }
 0x27e   : > { %v2522_v59 = vpop.f32.mrf.mxu3  ;;  %v1017_v9 = vmax.f32 %v1015_v58, %v2518_v17 }
 0x27f   : > { %v1054_v54 = vmax.f32 %v1052_v57, %v2522_v59 }
 0x285   : > { %v2538_v45 = vpop.f32.mrf.mxu2 }
 0x286   : > { %v1018_v7 = vmax.f32 %v1016_v56, %v2538_v45  ;;  %v2542_v60 = vpop.f32.mrf.mxu3 }
 0x287   : > { %v1055_v33 = vmax.f32 %v1053_v51, %v2542_v60 }
 0x288   : > { %v1019_v4 = vmax.f32 %v1017_v9, %v1018_v7 }
 0x289   : > { %v1056_v34 = vmax.f32 %v1054_v54, %v1055_v33  ;;  %v3087_v33 = vld [vmem:[#allocation11_spill] sm:$0xff] }
 0x28a   : > { %v1020_v30 = vrot.slane %v1019_v4, 4 }
 0x28b   : > { %v1057_v43 = vrot.slane %v1056_v34, 4 }
 0x28c   : > { %v1021_v50 = vmax.f32 %v1019_v4, %v1020_v30 }
 0x28d   : > { %v1058_v52 = vmax.f32 %v1056_v34, %v1057_v43  ;;  %v3088_v43 = vld [vmem:[#allocation12_spill] sm:$0xff] }
 0x28e   : > { %v1022_v46 = vrot.slane %v1021_v50, 2 }
 0x28f   : > { %v1059_v38 = vrot.slane %v1058_v52, 2 }
 0x290   : > { %v1023_v42 = vmax.f32 %v1021_v50, %v1022_v46 }
 0x291   : > { %v1060_v61 = vmax.f32 %v1058_v52, %v1059_v38 }
 0x292   : > { %v1024_v49 = vrot.slane %v1023_v42, 1 }
 0x293   : > { %v1061_v58 = vrot.slane %v1060_v61, 1 }
 0x294   : > { %v1025_v56 = vmax.f32 %v1023_v42, %v1024_v49 }
 0x295   : > { %v1062_v41 = vmax.f32 %v1060_v61, %v1061_v58 }
 0x297   : > { %v1065_v57 = vrot.slane %v1062_v41, 7 }
 0x299   : > { %v1067_v51 = vsel %vm1066_vm2, %v1025_v56, %v1065_v57  ;;  %v3090_v57 = vld [vmem:[#allocation18_spill] sm:$0xff] }
 0x29a   : > { %v2550_v9 = vmax.f32 %v2546_v40, %v1067_v51 }
 0x29c   : > { %3086 = vst [vmem:[#allocation30_spill] sm:$0xff] %v2550_v9  ;;  %v2558_v46 = vperm.slane %v2550_v9, 0  ;;  %v2561_v42 = vperm.slane %v2550_v9, 1 }
 0x29d   : > { %1522 = vst.msk [vmem:[#allocation3] sm:$0x3] %vm2486_vm1, %v2550_v9 }
 0x29e   : > { %v1078_v41 = vsub.f32 %v2386_v19, %v2558_v46  ;;  %v1079_v49 = vsub.f32 %v2390_v21, %v2561_v42  ;;  %v1080_v50 = vsub.f32 %v2398_v25, %v2558_v46  ;;  %v1081_v61 = vsub.f32 %v2400_v26, %v2561_v42  ;;  %v3089_v21 = vld [vmem:[#allocation13_spill] sm:$0xff] }
 0x29f   : > { %v1082_v7 = vsub.f32 %v2406_v29, %v2558_v46  ;;  %v1083_v4 = vsub.f32 %v3087_v33, %v2561_v42  ;;  %v1084_v19 = vsub.f32 %v3088_v43, %v2558_v46  ;;  %v1085_v38 = vsub.f32 %v3089_v21, %v2561_v42 }
 0x2a0   : > { %v1142_v54 = vmul.f32 1.442695, %v1078_v41  ;;  %v1144_v34 = vmul.f32 1.442695, %v1079_v49  ;;  %v1146_v52 = vmul.f32 1.442695, %v1080_v50  ;;  %v1086_v25 = vsub.f32 %v2422_v37, %v2558_v46 }
 0x2a1   : > { %v1148_v58 = vmul.f32 1.442695, %v1081_v61  ;;  %v1150_v26 = vmul.f32 1.442695, %v1082_v7  ;;  %v1087_v29 = vsub.f32 %v2426_v39, %v2561_v42  ;;  %v1152_v56 = vmul.f32 1.442695, %v1083_v4 }
 0x2a2   : > { %1996 = vpow2.f32 %v1142_v54  ;;  %v1088_v51 = vsub.f32 %v3090_v57, %v2558_v46  ;;  %v1154_v41 = vmul.f32 1.442695, %v1084_v19  ;;  %v3091_v49 = vld [vmem:[#allocation19_spill] sm:$0xff]  ;;  %v1156_v61 = vmul.f32 1.442695, %v1085_v38  ;;  %v3093_v38 = vld [vmem:[#allocation25_spill] sm:$0xff] }
 0x2a3   : > { %1998 = vpow2.f32 %v1144_v34  ;;  %v1089_v50 = vsub.f32 %v3091_v49, %v2561_v42  ;;  %v1090_v37 = vsub.f32 %v2442_v47, %v2558_v46  ;;  %v1158_v7 = vmul.f32 1.442695, %v1086_v25 }
 0x2a4   : > { %2000 = vpow2.f32 %v1146_v52  ;;  %v1091_v39 = vsub.f32 %v2444_v48, %v2561_v42  ;;  %v1160_v54 = vmul.f32 1.442695, %v1087_v29  ;;  %v1106_v4 = vsub.f32 %v2370_v11, %v2558_v46  ;;  %v3092_v48 = vld [vmem:[#allocation24_spill] sm:$0xff] }
 0x2a5   : > { %2002 = vpow2.f32 %v1148_v58  ;;  %v1162_v34 = vmul.f32 1.442695, %v1088_v51  ;;  %v1108_v19 = vsub.f32 %v2374_v13, %v2558_v46  ;;  %v1164_v47 = vmul.f32 1.442695, %v1089_v50 }
 0x2a6   : > { %2004 = vpow2.f32 %v1150_v26  ;;  %v1092_v21 = vsub.f32 %v3092_v48, %v2558_v46  ;;  %v1093_v58 = vsub.f32 %v3093_v38, %v2561_v42  ;;  %v1166_v25 = vmul.f32 1.442695, %v1090_v37 }
 0x2a7   : > { %2006 = vpow2.f32 %v1152_v56  ;;  %v1094_v26 = vsub.f32 %v2340_v62, %v2558_v46  ;;  %v1102_v13 = vsub.f32 %v2360_v6, %v2558_v46  ;;  %v1168_v29 = vmul.f32 1.442695, %v1091_v39  ;;  %v3094_v39 = vld [vmem:[#allocation6_spill] sm:$0xff] }
 0x2a8   : > { %v2591_v33 = vpop.eup %1996  ;;  %2008 = vpow2.f32 %v1154_v41  ;;  %v1095_v57 = vsub.f32 %v2342_v63, %v2561_v42  ;;  %v1104_v51 = vsub.f32 %v2364_v8, %v2558_v46  ;;  %v1198_v41 = vmul.f32 1.442695, %v1106_v4 }
 0x2a9   : > { %v2595_v43 = vpop.eup %1998  ;;  %2010 = vpow2.f32 %v1156_v61  ;;  %v1096_v62 = vsub.f32 %v2344_v0, %v2558_v46  ;;  %v1097_v6 = vsub.f32 %v2346_v1, %v2561_v42  ;;  %v1202_v50 = vmul.f32 1.442695, %v1108_v19  ;;  %v3096_v19 = vld [vmem:[#allocation8_spill] sm:$0xff] }
 0x2aa   : > { %v2599_v52 = vpop.eup %2000  ;;  %2012 = vpow2.f32 %v1158_v7  ;;  %v1098_v63 = vsub.f32 %v2350_v2, %v2558_v46  ;;  %v1099_v8 = vsub.f32 %v2352_v3, %v2561_v42  ;;  %v1170_v37 = vmul.f32 1.442695, %v1092_v21 }
 0x2ab   : > { %v2605_v11 = vpop.eup %2002  ;;  %2014 = vpow2.f32 %v1160_v54  ;;  %v1100_v0 = vsub.f32 %v3094_v39, %v2558_v46  ;;  %v3095_v54 = vld [vmem:[#allocation7_spill] sm:$0xff]  ;;  %v1190_v4 = vmul.f32 1.442695, %v1102_v13  ;;  %v1103_v2 = vsub.f32 %v3096_v19, %v2561_v42  ;;  %v3098_v19 = vld [vmem:[#allocation10_spill] sm:$0xff] }
 0x2ac   : > { %v2611_v56 = vpop.eup %2004  ;;  %2016 = vpow2.f32 %v1162_v34  ;;  %v1101_v1 = vsub.f32 %v3095_v54, %v2561_v42  ;;  %v1194_v48 = vmul.f32 1.442695, %v1104_v51  ;;  %v1107_v38 = vsub.f32 %v2372_v12, %v2561_v42 }
 0x2ad   : > { %v2617_v49 = vpop.eup %2006  ;;  %2018 = vpow2.f32 %v1164_v47  ;;  %v3097_v47 = vld [vmem:[#allocation9_spill] sm:$0xff]  ;;  %v1110_v39 = vsub.f32 %v2378_v15, %v2558_v46  ;;  %v1174_v54 = vmul.f32 1.442695, %v1094_v26  ;;  %v1272_v51 = vadd.f32 %v2599_v52, %v2591_v33 }
 0x2ae   : > { %v2623_v61 = vpop.eup %2008  ;;  %2020 = vpow2.f32 %v1166_v25  ;;  %v1105_v3 = vsub.f32 %v3097_v47, %v2561_v42  ;;  %v1109_v25 = vsub.f32 %v2376_v14, %v2561_v42  ;;  %v1111_v12 = vsub.f32 %v2380_v16, %v2561_v42 }
 0x2af   : > { %v2629_v7 = vpop.eup %2010  ;;  %2022 = vpow2.f32 %v1168_v29  ;;  %v1172_v29 = vmul.f32 1.442695, %v1093_v58  ;;  %v1182_v58 = vmul.f32 1.442695, %v1098_v63  ;;  %v1273_v26 = vadd.f32 %v2611_v56, %v1272_v51 }
 0x2b0   : > { %v2635_v34 = vpop.eup %2012  ;;  %2024 = vpow2.f32 %v1198_v41  ;;  %v1176_v63 = vmul.f32 1.442695, %v1095_v57  ;;  %v1180_v16 = vmul.f32 1.442695, %v1097_v6  ;;  %v1184_v14 = vmul.f32 1.442695, %v1099_v8 }
 0x2b1   : > { %v2641_v21 = vpop.eup %2014  ;;  %2026 = vpow2.f32 %v1202_v50  ;;  %v1309_v15 = vadd.f32 %v2605_v11, %v2595_v43  ;;  %v1192_v8 = vmul.f32 1.442695, %v1103_v2  ;;  %v1200_v30 = vmul.f32 1.442695, %v1107_v38  ;;  %v3099_v38 = vld [vmem:[#allocation14_spill] sm:$0xff] }
 0x2b2   : > { %v2647_v13 = vpop.eup %2016  ;;  %2028 = vpow2.f32 %v1170_v37  ;;  %v1186_v37 = vmul.f32 1.442695, %v1100_v0  ;;  %v1178_v0 = vmul.f32 1.442695, %v1096_v62  ;;  %v1134_v9 = vsub.f32 %v2478_v44, %v2558_v46 }
 0x2b3   : > { %v2653_v41 = vpop.eup %2018  ;;  %2030 = vpow2.f32 %v1190_v4  ;;  %v1135_v44 = vsub.f32 %v2482_v55, %v2561_v42 }
 0x2b4   : > { %v2659_v50 = vpop.eup %2020  ;;  %2032 = vpow2.f32 %v1194_v48  ;;  %v1274_v48 = vadd.f32 %v2623_v61, %v1273_v26  ;;  %v1188_v26 = vmul.f32 1.442695, %v1101_v1 }
 0x2b5   : > { %v2664_v47 = vpop.eup %2022  ;;  %2034 = vpow2.f32 %v1172_v29  ;;  %v1310_v29 = vadd.f32 %v2617_v49, %v1309_v15 }
 0x2b6   : > { %v2670_v4 = vpop.eup %2024  ;;  %2036 = vpow2.f32 %v1174_v54  ;;  %v1275_v62 = vadd.f32 %v2635_v34, %v1274_v48 }
 0x2b7   : > { %v2675_v51 = vpop.eup %2026  ;;  %2038 = vpow2.f32 %v1182_v58  ;;  %v1311_v40 = vadd.f32 %v2629_v7, %v1310_v29 }
 0x2b8   : > { %v2681_v57 = vpop.eup %2028  ;;  %2040 = vpow2.f32 %v1186_v37  ;;  %v1392_v6 = vpack.c.bf16 %v2675_v51, %v2670_v4  ;;  %v1276_v37 = vadd.f32 %v2647_v13, %v1275_v62  ;;  %v1204_v62 = vmul.f32 1.442695, %v1109_v25 }
 0x2b9   : > { %v2686_v54 = vpop.eup %2030  ;;  %2042 = vpow2.f32 %v1176_v63  ;;  %v1196_v63 = vmul.f32 1.442695, %v1105_v3  ;;  %v1208_v25 = vmul.f32 1.442695, %v1111_v12  ;;  %v1312_v29 = vadd.f32 %v2641_v21, %v1311_v40 }
 0x2ba   : > { %v2692_v58 = vpop.eup %2032  ;;  %2044 = vpow2.f32 %v1178_v0  ;;  %1430 = vmatpush.bf16.msra.mxu0 %v1392_v6  ;;  %v1277_v2 = vadd.f32 %v2659_v50, %v1276_v37  ;;  %v1206_v6 = vmul.f32 1.442695, %v1110_v39  ;;  %v3100_v39 = vsub.f32 %v3098_v19, %v2558_v46 }
 0x2bb   : > { %v2697_v48 = vpop.eup %2034  ;;  %2046 = vpow2.f32 %v1180_v16  ;;  %v1390_v16 = vpack.c.bf16 %v2692_v58, %v2686_v54  ;;  %v1313_v40 = vadd.f32 %v2653_v41, %v1312_v29 }
 0x2bc   : > { %v2037_v10 = vpop.eup %2036  ;;  %2048 = vpow2.f32 %v1184_v14  ;;  %v1278_v1 = vadd.f32 %v2681_v57, %v1277_v2 }
 0x2bd   : > { %v2039_v0 = vpop.eup %2038  ;;  %2050 = vpow2.f32 %v1188_v26 }
 0x2be   : > { %v2041_v3 = vpop.eup %2040  ;;  %2052 = vpow2.f32 %v1192_v8  ;;  %1431 = vmatpush.bf16.msra.mxu0 %v1390_v16  ;;  %v1210_v8 = vmul.f32 1.442695, %v3100_v39  ;;  %v1279_v2 = vadd.f32 %v2037_v10, %v1278_v1 }
 0x2bf   : > { %v2711_v14 = vpop.eup %2042  ;;  %2054 = vpow2.f32 %v1196_v63  ;;  %v3101_v63 = vsub.f32 %v2384_v18, %v2561_v42  ;;  %v1388_v16 = vpack.c.bf16 %v2041_v3, %v2039_v0  ;;  %v1136_v18 = vsub.f32 %v2496_v53, %v2558_v46 }
 0x2c0   : > { %v2045_v26 = vpop.eup %2044  ;;  %2056 = vpow2.f32 %v1200_v30  ;;  %v3102_v30 = vsub.f32 %v2388_v20, %v2558_v46  ;;  %v1137_v20 = vsub.f32 %v2502_v5, %v2561_v42  ;;  %v1138_v5 = vsub.f32 %v2518_v17, %v2558_v46 }
 0x2c1   : > { %v2721_v15 = vpop.eup %2046  ;;  %2058 = vpow2.f32 %v1204_v62  ;;  %v1212_v12 = vmul.f32 1.442695, %v3101_v63  ;;  %v1280_v1 = vadd.f32 %v2045_v26, %v1279_v2  ;;  %v3103_v62 = vsub.f32 %v2392_v22, %v2561_v42 }
 0x2c2   : > { %v2727_v37 = vpop.eup %2048  ;;  %2060 = vpow2.f32 %v1206_v6  ;;  %v1214_v19 = vmul.f32 1.442695, %v3102_v30  ;;  %v1314_v63 = vadd.f32 %v2664_v47, %v1313_v40  ;;  %1432 = vmatpush.bf16.msra.mxu0 %v1388_v16  ;;  %v3104_v6 = vsub.f32 %v2394_v23, %v2558_v46 }
 0x2c3   : > { %v2734_v39 = vpop.eup %2050  ;;  %2062 = vpow2.f32 %v1208_v25  ;;  %v1216_v29 = vmul.f32 1.442695, %v3103_v62  ;;  %v1281_v30 = vadd.f32 %v2039_v0, %v1280_v1  ;;  %v3105_v22 = vsub.f32 %v2396_v24, %v2561_v42 }
 0x2c4   : > { %v2742_v55 = vpop.eup %2052  ;;  %2064 = vpow2.f32 %v1210_v8  ;;  %v1218_v2 = vmul.f32 1.442695, %v3104_v6  ;;  %v1315_v40 = vadd.f32 %v2697_v48, %v1314_v63  ;;  %v1386_v16 = vpack.c.bf16 %v2045_v26, %v2037_v10 }
 0x2c5   : > { %v2749_v53 = vpop.eup %2054  ;;  %2066 = vpow2.f32 %v1212_v12  ;;  %v1220_v25 = vmul.f32 1.442695, %v3105_v22  ;;  %v3106_v23 = vsub.f32 %v2402_v27, %v2558_v46  ;;  %v1282_v8 = vadd.f32 %v2041_v3, %v1281_v30 }
 0x2c6   : > { %v2755_v62 = vpop.eup %2056  ;;  %2068 = vpow2.f32 %v1214_v19  ;;  %v1139_v24 = vsub.f32 %v2522_v59, %v2561_v42  ;;  %v1254_v12 = vmul.f32 1.442695, %v1134_v9  ;;  %v1316_v10 = vadd.f32 %v2711_v14, %v1315_v40  ;;  %1433 = vmatpush.bf16.msra.mxu0 %v1386_v16 }
 0x2c7   : > { %v1222_v0 = vmul.f32 1.442695, %v3106_v23  ;;  %v2762_v1 = vpop.eup %2058  ;;  %2070 = vpow2.f32 %v1216_v29  ;;  %v1140_v17 = vsub.f32 %v2538_v45, %v2558_v46  ;;  %v1256_v19 = vmul.f32 1.442695, %v1135_v44 }
 0x2c8   : > { %v2767_v26 = vpop.eup %2060  ;;  %2072 = vpow2.f32 %v1218_v2  ;;  %v1283_v27 = vadd.f32 %v2686_v54, %v1282_v8  ;;  %v1258_v63 = vmul.f32 1.442695, %v1136_v18  ;;  %v1317_v59 = vadd.f32 %v2721_v15, %v1316_v10  ;;  %v3107_v54 = vld [vmem:[#allocation15_spill] sm:$0xff] }
 0x2c9   : > { %v2772_v3 = vpop.eup %2062  ;;  %2074 = vpow2.f32 %v1220_v25  ;;  %v1384_v9 = vpack.c.bf16 %v2681_v57, %v2659_v50  ;;  %v1141_v6 = vsub.f32 %v2542_v60, %v2561_v42  ;;  %v1260_v45 = vmul.f32 1.442695, %v1137_v20  ;;  %v3108_v57 = vld [vmem:[#allocation16_spill] sm:$0xff] }
 0x2ca   : > { %v2777_v29 = vpop.eup %2064  ;;  %2076 = vpow2.f32 %v1222_v0  ;;  %v1284_v44 = vadd.f32 %v2692_v58, %v1283_v27  ;;  %v1125_v30 = vsub.f32 %v3107_v54, %v2561_v42  ;;  %v1262_v18 = vmul.f32 1.442695, %v1138_v5  ;;  %v3109_v0 = vld [vmem:[#allocation22_spill] sm:$0xff] }
 0x2cb   : > { %v2782_v2 = vpop.eup %2066  ;;  %2078 = vpow2.f32 %v1254_v12  ;;  %v1318_v22 = vadd.f32 %v2727_v37, %v1317_v59  ;;  %1434 = vmatpush.bf16.msra.mxu0 %v1384_v9  ;;  %v1126_v25 = vsub.f32 %v3108_v57, %v2558_v46  ;;  %v1264_v60 = vmul.f32 1.442695, %v1139_v24 }
 0x2cc   : > { %v2787_v50 = vpop.eup %2068  ;;  %2080 = vpow2.f32 %v1256_v19  ;;  %v1285_v20 = vadd.f32 %v2670_v4, %v1284_v44  ;;  %v1266_v40 = vmul.f32 1.442695, %v1140_v17  ;;  %v1382_v5 = vpack.c.bf16 %v2647_v13, %v2635_v34  ;;  %v3110_v4 = vld [vmem:[#allocation26_spill] sm:$0xff] }
 0x2cd   : > { %v2792_v58 = vpop.eup %2070  ;;  %2082 = vpow2.f32 %v1258_v63  ;;  %v1319_v16 = vadd.f32 %v2734_v39, %v1318_v22  ;;  %v1130_v8 = vsub.f32 %v3109_v0, %v2558_v46  ;;  %v1268_v12 = vmul.f32 1.442695, %v1141_v6  ;;  %v3112_v63 = vld [vmem:[#allocation20_spill] sm:$0xff] }
 0x2ce   : > { %v2797_v23 = vpop.eup %2072  ;;  %2084 = vpow2.f32 %v1260_v45  ;;  %v1286_v24 = vadd.f32 %v2675_v51, %v1285_v20  ;;  %v1132_v19 = vsub.f32 %v3110_v4, %v2558_v46  ;;  %v3111_v17 = vsub.f32 %v2410_v31, %v2558_v46 }
 0x2cf   : > { %v2802_v10 = vpop.eup %2074  ;;  %2086 = vpow2.f32 %v1262_v18  ;;  %v1320_v34 = vadd.f32 %v2742_v55, %v1319_v16  ;;  %1435 = vmatpush.bf16.msra.mxu0 %v1382_v5  ;;  %v1128_v59 = vsub.f32 %v3112_v63, %v2558_v46  ;;  %v3113_v51 = vsub.f32 %v2418_v35, %v2558_v46 }
 0x2d0   : > { %v1226_v27 = vmul.f32 1.442695, %v3111_v17  ;;  %v2810_v13 = vpop.eup %2076  ;;  %2088 = vpow2.f32 %v1264_v60  ;;  %v1287_v6 = vadd.f32 %v2767_v26, %v1286_v24  ;;  %v3114_v31 = vsub.f32 %v3099_v38, %v2558_v46 }
 0x2d1   : > { %v1230_v9 = vmul.f32 1.442695, %v3113_v51  ;;  %v2818_v45 = vpop.eup %2078  ;;  %2090 = vpow2.f32 %v1266_v40  ;;  %v1321_v18 = vadd.f32 %v2749_v53, %v1320_v34  ;;  %v1380_v22 = vpack.c.bf16 %v2623_v61, %v2611_v56  ;;  %v3118_v51 = vld [vmem:[#allocation17_spill] sm:$0xff] }
 0x2d2   : > { %v1234_v44 = vmul.f32 1.442695, %v3114_v31  ;;  %v2826_v57 = vpop.eup %2080  ;;  %v3115_v35 = vsub.f32 %v2404_v28, %v2561_v42  ;;  %v1246_v20 = vmul.f32 1.442695, %v1130_v8  ;;  %2092 = vpow2.f32 %v1268_v12  ;;  %v1953_v31 = vld [vmem:[%s2844_s17 + $0x4] sm:$0xf0] }
 0x2d3   : > { %v1288_v16 = vadd.f32 %v2777_v29, %v1287_v6  ;;  %v2832_v5 = vpop.eup %2082  ;;  %2094 = vpow2.f32 %v1226_v27  ;;  %v3116_v46 = vsub.f32 %v2412_v32, %v2561_v42  ;;  %v1250_v40 = vmul.f32 1.442695, %v1132_v19  ;;  %1436 = vmatpush.bf16.msra.mxu0 %v1380_v22  ;;  %v1912_v6 = vld [vmem:[%s2844_s17] sm:$0xf] }
 0x2d4   : > { %v1224_v60 = vmul.f32 1.442695, %v3115_v35  ;;  %v1322_v56 = vadd.f32 %v2755_v62, %v1321_v18  ;;  %v2838_v61 = vpop.eup %2084  ;;  %2096 = vpow2.f32 %v1230_v9  ;;  %v1238_v28 = vmul.f32 1.442695, %v1126_v25 }
 0x2d5   : > { %v1228_v38 = vmul.f32 1.442695, %v3116_v46  ;;  %v1289_v0 = vadd.f32 %v2787_v50, %v1288_v16  ;;  %v1406_v8 = vpack.c.bf16 %v2832_v5, %v2818_v45  ;;  %v2849_v32 = vpop.eup %2086  ;;  %2098 = vpow2.f32 %v1234_v44 }
 0x2d6   : > { %v1323_v12 = vadd.f32 %v2762_v1, %v1322_v56  ;;  %v1378_v24 = vpack.c.bf16 %v2599_v52, %v2591_v33  ;;  %v1407_v4 = vpack.c.bf16 %v2838_v61, %v2826_v57  ;;  %v2856_v19 = vpop.eup %2088  ;;  %v3117_v25 = vsub.f32 %v2420_v36, %v2561_v42 }
 0x2d7   : > { %2100 = vpow2.f32 %v1246_v20  ;;  %v1290_v27 = vadd.f32 %v2797_v23, %v1289_v0  ;;  %v1393_v34 = vpack.c.bf16 %v2762_v1, %v2755_v62  ;;  %v2864_v63 = vpop.eup %2090  ;;  %v1127_v33 = vsub.f32 %v3118_v51, %v2561_v42 }
 0x2d8   : > { %v1232_v17 = vmul.f32 1.442695, %v3117_v25  ;;  %v1242_v52 = vmul.f32 1.442695, %v1128_v59  ;;  %2102 = vpow2.f32 %v1250_v40  ;;  %v1324_v9 = vadd.f32 %v2772_v3, %v1323_v12  ;;  %1437 = vmatpush.bf16.msra.mxu0 %v1378_v24  ;;  %v2871_v36 = vpop.eup %2092  ;;  %v3119_v59 = vld [vmem:[#allocation21_spill] sm:$0xff]  ;;  %v3120_v12 = vld [vmem:[#allocation23_spill] sm:$0xff] }
 0x2d9   : > { %2104 = vpow2.f32 %v1224_v60  ;;  %v1291_v44 = vadd.f32 %v2810_v13, %v1290_v27  ;;  %v1408_v62 = vpack.c.bf16 %v2864_v63, %v2849_v32  ;;  %v2876_v1 = vor.u32 %v1953_v31, %v1912_v6  ;;  %v2878_v18 = vpop.eup %2094  ;;  %v3121_v25 = vld [vmem:[#allocation27_spill] sm:$0xff] }
 0x2da   : > { %v1129_v22 = vsub.f32 %v3119_v59, %v2561_v42  ;;  %2106 = vpow2.f32 %v1238_v28  ;;  %v1325_v35 = vadd.f32 %v2782_v2, %v1324_v9  ;;  %v1409_v20 = vpack.c.bf16 %v2871_v36, %v2856_v19  ;;  %v2885_v60 = vpop.eup %2096 }
 0x2db   : > { %2108 = vpow2.f32 %v1228_v38  ;;  %v1236_v16 = vmul.f32 1.442695, %v1125_v30  ;;  %v1292_v46 = vadd.f32 %v2878_v18, %v1291_v44  ;;  %1449 = vmatpush.bf16.msra.mxu1 %v1408_v62  ;;  %1438 = vmatmul.bf16.vlgmr.msra.gmra.mxu0 %v2876_v1  ;;  %v1391_v40 = vpack.c.bf16 %v2749_v53, %v2742_v55  ;;  %v2099_v56 = vpop.eup %2098 }
 0x2dc   : > { %1468 = vmatpush.bf16.msrb.mxu0 %v1393_v34  ;;  %2110 = vpow2.f32 %v1242_v52  ;;  %v1326_v28 = vadd.f32 %v2792_v58, %v1325_v35  ;;  %v1131_v38 = vsub.f32 %v3120_v12, %v2561_v42  ;;  %v1240_v24 = vmul.f32 1.442695, %v1127_v33 }
 0x2dd   : > { %v2101_v0 = vpop.eup %2100  ;;  %2112 = vpow2.f32 %v1232_v17  ;;  %v1293_v54 = vadd.f32 %v2885_v60, %v1292_v46  ;;  %v1133_v27 = vsub.f32 %v3121_v25, %v2561_v42  ;;  %v1244_v53 = vmul.f32 1.442695, %v1129_v22 }
 0x2de   : > { %v2103_v30 = vpop.eup %2102  ;;  %v1327_v34 = vadd.f32 %v2802_v10, %v1326_v28  ;;  %2114 = vpow2.f32 %v1236_v16  ;;  %v1389_v52 = vpack.c.bf16 %v2734_v39, %v2727_v37  ;;  %v1248_v6 = vmul.f32 1.442695, %v1131_v38 }
 0x2df   : > { %v2901_v55 = vpop.eup %2104  ;;  %v1294_v51 = vadd.f32 %v2099_v56, %v1293_v54  ;;  %1450 = vmatpush.bf16.msra.mxu1 %v1406_v8  ;;  %2116 = vpow2.f32 %v1240_v24  ;;  %v1404_v42 = vpack.c.bf16 %v2103_v30, %v2101_v0  ;;  %v1252_v8 = vmul.f32 1.442695, %v1133_v27  ;;  %v1955_v24 = vld [vmem:[%s2844_s17 + $0x14] sm:$0xf0] }
 0x2e0   : > { %1469 = vmatpush.bf16.msrb.mxu0 %v1391_v40  ;;  %v2107_v17 = vpop.eup %2106  ;;  %v1328_v33 = vadd.f32 %v2901_v55, %v1327_v34  ;;  %2118 = vpow2.f32 %v1244_v53  ;;  %v1387_v37 = vpack.c.bf16 %v2721_v15, %v2711_v14  ;;  %v1385_v38 = vpack.c.bf16 %v2697_v48, %v2664_v47  ;;  %v1920_v14 = vld [vmem:[%s2844_s17 + $0x10] sm:$0xf] }
 0x2e1   : > { %v2906_v9 = vpop.eup %2108  ;;  %v1295_v31 = vadd.f32 %v2107_v17, %v1294_v51  ;;  %2120 = vpow2.f32 %v1248_v6  ;;  %v2926_v27 = vor.u32 %v1955_v24, %v1920_v14  ;;  %v1383_v47 = vpack.c.bf16 %v2653_v41, %v2641_v21 }
 0x2e2   : > { %v2111_v44 = vpop.eup %2110  ;;  %v1329_v62 = vadd.f32 %v2906_v9, %v1328_v33  ;;  %2122 = vpow2.f32 %v1252_v8  ;;  %v1396_v41 = vpack.c.bf16 %v2797_v23, %v2787_v50  ;;  %v1952_v33 = vld [vmem:[%s2844_s17 + $0x4] sm:$0xf]  ;;  %v3122_v50 = vld [vmem:[#allocation29_spill] sm:$0xff]  ;;  %v1397_v24 = vpack.c.bf16 %v2802_v10, %v2792_v58 }
 0x2e3   : > { %v2909_v59 = vpop.eup %2112  ;;  %v1296_v22 = vadd.f32 %v2111_v44, %v1295_v31  ;;  %1451 = vmatpush.bf16.msra.mxu1 %v1404_v42  ;;  %v1402_v46 = vpack.c.bf16 %v2111_v44, %v2107_v17  ;;  %v3123_v23 = vld [vmem:[#allocation30_spill] sm:$0xff] }
 0x2e4   : > { %1470 = vmatpush.bf16.msrb.mxu0 %v1389_v52  ;;  %v1330_v39 = vadd.f32 %v2909_v59, %v1329_v62  ;;  %v2914_v35 = vpop.eup %2114  ;;  %v3124_v42 = vsub.f32 %v3122_v50, %v3123_v23  ;;  %v1961_v23 = vld [vmem:[%s3029_s7 + $0x8] sm:$0xff] }
 0x2e5   : > { %v1297_v16 = vadd.f32 %v2101_v0, %v1296_v22  ;;  %v2917_v28 = vpop.eup %2116  ;;  %v1400_v0 = vpack.c.bf16 %v2099_v56, %v2885_v60  ;;  %v1398_v60 = vpack.c.bf16 %v2878_v18, %v2810_v13  ;;  %v1914_v13 = vld [vmem:[%s2844_s17 + $0x8] sm:$0xf0]  ;;  %v1379_v18 = vpack.c.bf16 %v2605_v11, %v2595_v43 }
 0x2e6   : > { %v1331_v40 = vadd.f32 %v2914_v35, %v1330_v39  ;;  %v2119_v54 = vpop.eup %2118  ;;  %v1917_v31 = vor.u32 %v1952_v33, %v1914_v13  ;;  %v1071_v44 = vmul.f32 1.442695, %v3124_v42 }
 0x2e7   : > { %v1298_v12 = vadd.f32 %v2103_v30, %v1297_v16  ;;  %1452 = vmatpush.bf16.msra.mxu1 %v1402_v46  ;;  %v2121_v53 = vpop.eup %2120  ;;  %v1403_v16 = vpack.c.bf16 %v2119_v54, %v2917_v28  ;;  %v1954_v46 = vld [vmem:[%s2844_s17 + $0x14] sm:$0xf] }
 0x2e8   : > { %1471 = vmatpush.bf16.msrb.mxu0 %v1387_v37  ;;  %v1332_v15 = vadd.f32 %v2917_v28, %v1331_v40  ;;  %v2123_v51 = vpop.eup %2122  ;;  %2124 = vpow2.f32 %v1071_v44  ;;  %v1399_v28 = vpack.c.bf16 %v2906_v9, %v2901_v55 }
 0x2e9   : > { %v1299_v25 = vadd.f32 %v2818_v45, %v1298_v12  ;;  %v1405_v22 = vpack.c.bf16 %v2123_v51, %v2121_v53 }
 0x2ea   : > { %v1333_v34 = vadd.f32 %v2119_v54, %v1332_v15 }
 0x2eb   : > { %v1300_v30 = vadd.f32 %v2832_v5, %v1299_v25  ;;  %1453 = vmatpush.bf16.msra.mxu1 %v1400_v0  ;;  %1443 = vmatmul.bf16.gmra.mxu0 %v2926_v27  ;;  %v1381_v5 = vpack.c.bf16 %v2629_v7, %v2617_v49  ;;  %v1394_v49 = vpack.c.bf16 %v2777_v29, %v2767_v26 }
 0x2ec   : > { %1472 = vmatpush.bf16.msrb.mxu0 %v1385_v38  ;;  %v1334_v48 = vadd.f32 %v2121_v53, %v1333_v34 }
 0x2ed   : > { %v1301_v45 = vadd.f32 %v2849_v32, %v1300_v30 }
 0x2ee   : > { %v1335_v56 = vadd.f32 %v2123_v51, %v1334_v48 }
 0x2ef   : > { %v1302_v52 = vadd.f32 %v2864_v63, %v1301_v45  ;;  %1454 = vmatpush.bf16.msra.mxu1 %v1398_v60 }
 0x2f0   : > { %1473 = vmatpush.bf16.msrb.mxu0 %v1383_v47  ;;  %v1336_v17 = vadd.f32 %v2826_v57, %v1335_v56 }
 0x2f1   : > { %v1303_v21 = vrot.slane %v1302_v52, 4 }
 0x2f2   : > { %v1337_v32 = vadd.f32 %v2838_v61, %v1336_v17  ;;  %v1401_v61 = vpack.c.bf16 %v2914_v35, %v2909_v59  ;;  %v1395_v59 = vpack.c.bf16 %v2782_v2, %v2772_v3 }
 0x2f3   : > { %1455 = vmatpush.bf16.msra.mxu1 %v1396_v41  ;;  %v1304_v63 = vadd.f32 %v1303_v21, %v1302_v52 }
 0x2f4   : > { %1474 = vmatpush.bf16.msrb.mxu0 %v1381_v5  ;;  %v1338_v6 = vadd.f32 %v2856_v19, %v1337_v32  ;;  %v2960_v19 = vpop.eup %2124 }
 0x2f5   : > { %v1305_v62 = vrot.slane %v1304_v63, 2  ;;  %v1367_v50 = vperm.slane %v2960_v19, 1 }
 0x2f6   : > { %v1339_v7 = vadd.f32 %v2871_v36, %v1338_v6  ;;  %v1270_v36 = vld [vmem:[#allocation4] sm:$0x3] }
 0x2f7   : > { %1456 = vmatpush.bf16.msra.mxu1 %v1394_v49  ;;  %v1306_v11 = vadd.f32 %v1305_v62, %v1304_v63  ;;  %v1271_v38 = vmul.f32 %v2960_v19, %v1270_v36  ;;  %v1960_v6 = vld [vmem:[%s3029_s7] sm:$0xff]  ;;  %v1371_v62 = vmul.f32 0.0, %v1367_v50 }
 0x2f8   : > { %1475 = vmatpush.bf16.msrb.mxu0 %v1379_v18  ;;  %v1340_v8 = vrot.slane %v1339_v7, 4 }
 0x2f9   : > { %v1307_v37 = vrot.slane %v1306_v11, 1 }
 0x2fa   : > { %v1341_v43 = vadd.f32 %v1340_v8, %v1339_v7  ;;  %1457 = vmatmul.bf16.vlgmr.msra.gmra.mxu1 %v1917_v31 }
 0x2fb   : > { %1487 = vmatpush.bf16.msrb.mxu1 %v1409_v20  ;;  %1476 = vmatmul.bf16.vlgmr.msrb.gmra.mxu0 %v2876_v1  ;;  %v1922_v1 = vld [vmem:[%s2844_s17 + $0x18] sm:$0xf0]  ;;  %v1308_v40 = vadd.f32 %v1307_v37, %v1306_v11 }
 0x2fc   : > { %v1342_v26 = vrot.slane %v1341_v43, 2 }
 0x2fe   : > { %v1343_v29 = vadd.f32 %v1342_v26, %v1341_v43 }
 0x2ff   : > { %1488 = vmatpush.bf16.msrb.mxu1 %v1407_v4  ;;  %v1925_v4 = vor.u32 %v1954_v46, %v1922_v1 }
 0x300   : > { %v1344_v39 = vrot.slane %v1343_v29, 1 }
 0x302   : > { %v1345_v20 = vadd.f32 %v1344_v39, %v1343_v29 }
 0x303   : > { %1489 = vmatpush.bf16.msrb.mxu1 %v1405_v22 }
 0x304   : > { %v1348_v12 = vrot.slane %v1345_v20, 7 }
 0x306   : > { %v1349_v57 = vsel %vm1066_vm2, %v1308_v40, %v1348_v12  ;;  %v1611_v12 = vld [vmem:[%s2270_s26] sm:$0xff] }
 0x307   : > { %1490 = vmatpush.bf16.msrb.mxu1 %v1403_v16  ;;  %v1351_v15 = vadd.f32 %v1349_v57, %v1271_v38 }
 0x309   : > { %1356 = vst.msk [vmem:[#allocation4] sm:$0x3] %vm2486_vm1, %v1351_v15  ;;  %v1613_v15 = vld [vmem:[%s2270_s26 + $0x10] sm:$0xff] }
 0x30a   : > { %1462 = vmatmul.bf16.gmra.mxu1 %v1925_v4 }
 0x30b   : > { %1491 = vmatpush.bf16.msrb.mxu1 %v1401_v61  ;;  %1481 = vmatmul.bf16.gmra.mxu0 %v2926_v27  ;;  %v1366_v27 = vperm.slane %v2960_v19, 0  ;;  %v1634_v61 = vpop.permute.xlu1 %1633 }
 0x30d   : > { %v1370_v58 = vmul.f32 0.0, %v1366_v27 }
 0x30f   : > { %1492 = vmatpush.bf16.msrb.mxu1 %v1399_v28 }
 0x310   : > { %v1534_v55 = vld [vmem:[#allocation4] sm:$0x3] }
 0x311   : > { %2126 = vrcp.f32 %v1534_v55 }
 0x313   : > { %1493 = vmatpush.bf16.msrb.mxu1 %v1397_v24  ;;  %v1639_v24 = vpop.permute.xlu2 %1638 }
 0x317   : > { %1494 = vmatpush.bf16.msrb.mxu1 %v1395_v59  ;;  %v2127_v47 = vpop.eup %2126 }
 0x318   : > { %v1537_v60 = vperm.slane %v2127_v47, 0  ;;  %v1538_v22 = vperm.slane %v2127_v47, 1 }
 0x31a   : > { %1495 = vmatmul.bf16.vlgmr.msrb.gmra.mxu1 %v1917_v31 }
 0x31b   : > { %v1649_v27 = vpop.permute.xlu2 %1648 }
 0x32a   : > { %1500 = vmatmul.bf16.gmra.mxu1 %v1925_v4 }
 0x358   : > { %v1439_v35 = vpop.f32.mrf.mxu0 }
 0x360   : > { %v1441_v54 = vpop.f32.mrf.mxu0 }
 0x368   : > { %v1444_v0 = vpop.f32.mrf.mxu0 }
 0x370   : > { %v1446_v53 = vpop.f32.mrf.mxu0 }
 0x377   : > { %v1458_v25 = vpop.f32.mrf.mxu1 }
 0x378   : > { %v1477_v3 = vpop.f32.mrf.mxu0  ;;  %v1459_v2 = vadd.f32 %v1458_v25, %v1439_v35  ;;  %v1615_v35 = vld [vmem:[%s2270_s26 + $0x20] sm:$0xff] }
 0x37a   : > { %v1506_v5 = vadd.f32 %v1459_v2, %v1370_v58 }
 0x37c   : > { %v1541_v13 = vmul.f32 %v1537_v60, %v1506_v5 }
 0x37f   : > { %v1460_v34 = vpop.f32.mrf.mxu1 }
 0x380   : > { %v1461_v10 = vadd.f32 %v1460_v34, %v1441_v54  ;;  %v1479_v18 = vpop.f32.mrf.mxu0 }
 0x382   : > { %v1508_v56 = vadd.f32 %v1461_v10, %v1370_v58 }
 0x384   : > { %v1543_v41 = vmul.f32 %v1537_v60, %v1508_v56 }
 0x386   : > { %v1553_v63 = vpack.c.bf16 %v1543_v41, %v1541_v13 }
 0x387   : > { %v1463_v9 = vpop.f32.mrf.mxu1 }
 0x388   : > { %v1464_v30 = vadd.f32 %v1463_v9, %v1444_v0  ;;  %v1482_v7 = vpop.f32.mrf.mxu0  ;;  %v1644_v0 = vpop.permute.xlu1 %1643 }
 0x38a   : > { %v1510_v51 = vadd.f32 %v1464_v30, %v1370_v58 }
 0x38c   : > { %v1545_v17 = vmul.f32 %v1537_v60, %v1510_v51 }
 0x38f   : > { %v1465_v48 = vpop.f32.mrf.mxu1 }
 0x390   : > { %v1466_v45 = vadd.f32 %v1465_v48, %v1446_v53  ;;  %v1484_v44 = vpop.f32.mrf.mxu0  ;;  %v1617_v53 = vld [vmem:[%s2270_s26 + $0x30] sm:$0xff] }
 0x392   : > { %v1512_v52 = vadd.f32 %v1466_v45, %v1370_v58  ;;  %v1612_v58 = vld [vmem:[%s2270_s26 + $0x8] sm:$0xff] }
 0x394   : > { %v1547_v21 = vmul.f32 %v1537_v60, %v1512_v52  ;;  %v1616_v60 = vld [vmem:[%s2270_s26 + $0x28] sm:$0xff] }
 0x396   : > { %v1555_v32 = vpack.c.bf16 %v1547_v21, %v1545_v17  ;;  %v1618_v17 = vld [vmem:[%s2270_s26 + $0x38] sm:$0xff] }
 0x397   : > { %v1496_v33 = vpop.f32.mrf.mxu1 }
 0x398   : > { %1579 = vmatpush.bf16.msra.mxu0 %v1555_v32  ;;  %v1497_v11 = vadd.f32 %v1496_v33, %v1477_v3  ;;  %v1614_v3 = vld [vmem:[%s2270_s26 + $0x18] sm:$0xff] }
 0x39a   : > { %v1507_v19 = vadd.f32 %v1497_v11, %v1371_v62 }
 0x39c   : > { %1580 = vmatpush.bf16.msra.mxu0 %v1553_v63  ;;  %v1542_v1 = vmul.f32 %v1538_v22, %v1507_v19 }
 0x39f   : > { %v1498_v49 = vpop.f32.mrf.mxu1  ;;  %1934 = vmatmul.msk.bf16.vlgmr.msra.gmra.mxu0 %vm610_vm0, %v1960_v6 }
 0x3a0   : > { %v1499_v8 = vadd.f32 %v1498_v49, %v1479_v18 }
 0x3a2   : > { %v1509_v37 = vadd.f32 %v1499_v8, %v1371_v62 }
 0x3a4   : > { %v1544_v16 = vmul.f32 %v1538_v22, %v1509_v37 }
 0x3a6   : > { %v1554_v40 = vpack.c.bf16 %v1544_v16, %v1542_v1 }
 0x3a7   : > { %v1501_v31 = vpop.f32.mrf.mxu1 }
 0x3a8   : > { %v1502_v42 = vadd.f32 %v1501_v31, %v1482_v7 }
 0x3aa   : > { %v1511_v26 = vadd.f32 %v1502_v42, %v1371_v62 }
 0x3ac   : > { %v1546_v36 = vmul.f32 %v1538_v22, %v1511_v26 }
 0x3af   : > { %v1503_v43 = vpop.f32.mrf.mxu1  ;;  %1935 = vmatmul.msk.bf16.gmra.mxu0 %vm610_vm0, %v1961_v23 }
 0x3b0   : > { %v1504_v29 = vadd.f32 %v1503_v43, %v1484_v44 }
 0x3b2   : > { %v1513_v39 = vadd.f32 %v1504_v29, %v1371_v62 }
 0x3b4   : > { %v1548_v20 = vmul.f32 %v1538_v22, %v1513_v39 }
 0x3b6   : > { %v1556_v46 = vpack.c.bf16 %v1548_v20, %v1546_v36 }
 0x3b8   : > { %1598 = vmatpush.bf16.msra.mxu1 %v1556_v46 }
 0x3bc   : > { %1599 = vmatpush.bf16.msra.mxu1 %v1554_v40 }
 0x3bf   : > { %1936 = vmatmul.msk.bf16.vlgmr.msra.gmra.mxu1 %vm610_vm0, %v1960_v6 }
 0x3cf   : > { %1937 = vmatmul.msk.bf16.gmra.mxu1 %vm610_vm0, %v1961_v23 }
 0x41c   : > { %v1582_v38 = vpop.f32.mrf.mxu0 }
 0x41d   : > { %v1619_v57 = vadd.f32 %v1611_v12, %v1582_v38 }
 0x41f   : > { %v1651_v4 = vadd.f32 %v1634_v61, %v1619_v57 }
 0x421   : > { %1659 = vst [vmem:[%s2996_s24] sm:$0xff] %v1651_v4 }
 0x424   : > { %v1584_v14 = vpop.f32.mrf.mxu0 }
 0x425   : > { %v1621_v28 = vadd.f32 %v1613_v15, %v1584_v14 }
 0x427   : > { %v1653_v59 = vadd.f32 %v1639_v24, %v1621_v28 }
 0x429   : > { %1661 = vst [vmem:[%s2996_s24 + $0x10] sm:$0xff] %v1653_v59 }
 0x42c   : > { %v1587_v54 = vpop.f32.mrf.mxu0 }
 0x42d   : > { %v1623_v25 = vadd.f32 %v1615_v35, %v1587_v54 }
 0x42f   : > { %v1655_v34 = vadd.f32 %v1644_v0, %v1623_v25 }
 0x431   : > { %1663 = vst [vmem:[%s2996_s24 + $0x20] sm:$0xff] %v1655_v34 }
 0x434   : > { %v1589_v55 = vpop.f32.mrf.mxu0 }
 0x435   : > { %v1625_v9 = vadd.f32 %v1617_v53, %v1589_v55 }
 0x437   : > { %v1657_v30 = vadd.f32 %v1649_v27, %v1625_v9 }
 0x439   : > { %1665 = vst [vmem:[%s2996_s24 + $0x30] sm:$0xff] %v1657_v30 }
 0x43c   : > { %v1601_v10 = vpop.f32.mrf.mxu1 }
 0x43d   : > { %v1620_v47 = vadd.f32 %v1612_v58, %v1601_v10 }
 0x43f   : > { %v1652_v48 = vadd.f32 %v1634_v61, %v1620_v47 }
 0x441   : > { %1660 = vst [vmem:[%s2996_s24 + $0x8] sm:$0xff] %v1652_v48 }
 0x444   : > { %v1603_v2 = vpop.f32.mrf.mxu1 }
 0x445   : > { %v1622_v51 = vadd.f32 %v1614_v3, %v1603_v2 }
 0x447   : > { %v1654_v45 = vadd.f32 %v1639_v24, %v1622_v51 }
 0x449   : > { %1662 = vst [vmem:[%s2996_s24 + $0x18] sm:$0xff] %v1654_v45 }
 0x44c   : > { %v1606_v56 = vpop.f32.mrf.mxu1 }
 0x44d   : > { %v1624_v52 = vadd.f32 %v1616_v60, %v1606_v56 }
 0x44f   : > { %v1656_v5 = vadd.f32 %v1644_v0, %v1624_v52 }
 0x451   : > { %1664 = vst [vmem:[%s2996_s24 + $0x28] sm:$0xff] %v1656_v5 }
 0x454   : > { %v1608_v21 = vpop.f32.mrf.mxu1 }
 0x455   : > { %v1626_v41 = vadd.f32 %v1618_v17, %v1608_v21 }
 0x457   : > { %v1658_v32 = vadd.f32 %v1649_v27, %v1626_v41 }
 0x459   : > { %1666 = vst [vmem:[%s2996_s24 + $0x38] sm:$0xff] %v1658_v32 }
 0x45a PF: > { %s19_s11 = sadd.s32 1, %s2150_s11   ;;  %s3126_s30 = smov %s2146_s10 }
 0x45b   : > { %p16_p5 = scmp.ge.s32.totalorder %s19_s11, 4   ;;  %s3127_s10 = smov %s3129_s12 }
 0x45d   :  { %18 = sbr.rel (!%p16_p5) target bundleno = 2 (0x2), region = 106 }

</bundles_post_ra>
